<compile_context>
chip_gen: v6e
topology: v6e:2x2x1
jax: 0.10.0
libtpu: 0.0.40
codegen_flags: <defaults>
</compile_context>

<pallas_src>
import functools

import jax
import jax.numpy as jnp
from jax.experimental import pallas as pl
from jax.experimental.pallas import tpu as pltpu

KS = 5
PAD = (KS - 1) // 2
LANES = 128


def _round_up(a, b):
    return (a + b - 1) // b * b


def _sab_kernel(w_ref, mask_ref, x_ref, o_ref, *, img_w):
    # w_ref   : SMEM (2*KS*KS,) f32     flattened conv weight, idx = ch*25 + dy*5 + dx
    # mask_ref: VMEM (2*KS, R, 128) f32 [0:KS] column masks (per dx), [KS:] row masks (per dy)
    # x_ref   : VMEM (C, R, 128)        one image, H*W flattened row-major onto R*128 lanes
    # o_ref   : VMEM (C, R, 128)
    n_chan, n_rows, n_lanes = x_ref.shape
    f32 = jnp.float32

    # ---- ChannelPool: streaming max / mean over channels (no whole-block live value)
    def pool_body(c, carry):
        m, s = carry
        v = x_ref[c].astype(f32)
        return jnp.maximum(m, v), s + v

    v0 = x_ref[0].astype(f32)
    ch_max, ch_sum = jax.lax.fori_loop(1, n_chan, pool_body, (v0, v0),
                                       unroll=(n_chan <= 8))
    ch_mean = ch_sum * (1.0 / n_chan)

    lane_idx = jax.lax.broadcasted_iota(jnp.int32, (n_rows, n_lanes), 1)
    flat_size = n_rows * n_lanes

    def flat_shift(p, s):
        """out[i] = p[(i + s) mod flat_size], i = row-major flat index over (R, 128)."""
        s = s % flat_size
        if s == 0:
            return p
        q, rl = divmod(s, n_lanes)
        if q:                                               # whole-sublane part of the shift
            p = pltpu.roll(p, shift=n_rows - q, axis=0)
        if rl == 0:
            return p
        a = pltpu.roll(p, shift=n_lanes - rl, axis=1)       # a[r,l] = p[r, (l+rl) % 128]
        b = pltpu.roll(a, shift=n_rows - 1, axis=0) if n_rows > 1 else a
        return jnp.where(lane_idx < n_lanes - rl, a, b)     # carry across the row boundary

    # ---- 5x5 "same" conv (2 -> 1 channels, no bias), all off the MXU ----------
    def col_taps(plane):
        taps = []
        for dx in range(KS):
            sx = dx - PAD
            t = flat_shift(plane, sx)
            if sx != 0:                                     # dx == PAD mask is identity: skip
                t = t * mask_ref[dx]
            taps.append(t)
        return taps

    # Hoist the 10 column-shifted planes only while they fit comfortably in vregs;
    # otherwise recompute per dy to bound the live set (review item for large H*W).
    hoist = n_rows <= 16
    if hoist:
        max_taps = col_taps(ch_max)
        mean_taps = col_taps(ch_mean)

    acc = jnp.zeros((n_rows, n_lanes), f32)
    for dy in range(KS):
        sy = dy - PAD
        p = jnp.zeros((n_rows, n_lanes), f32)
        for dx in range(KS):
            if hoist:
                t_max, t_mean = max_taps[dx], mean_taps[dx]
            else:
                sx = dx - PAD
                t_max = flat_shift(ch_max, sx)
                t_mean = flat_shift(ch_mean, sx)
                if sx != 0:
                    cm = mask_ref[dx]
                    t_max = t_max * cm
                    t_mean = t_mean * cm
            w_max = w_ref[dy * KS + dx]                     # weight on the channel-max plane
            w_mean = w_ref[KS * KS + dy * KS + dx]          # weight on the channel-mean plane
            p = p + w_max * t_max + w_mean * t_mean         # scalar * vector VPU FMAs
        q = flat_shift(p, sy * img_w)                       # row shift = lane shift by sy*W
        if sy != 0:                                         # dy == PAD row mask is identity: skip
            q = q * mask_ref[KS + dy]
        acc = acc + q

    conv = jnp.maximum(acc, 0.0)                            # ReLU
    # Exact sigmoid (the approx reciprocal previously exceeded the test tolerance).
    scale = 1.0 / (1.0 + jnp.exp(-conv))

    # ---- Rescale: stream channels again; f32 math, cast once at the store -----
    def store_body(c, carry):
        o_ref[c] = (x_ref[c].astype(f32) * scale).astype(o_ref.dtype)
        return carry

    jax.lax.fori_loop(0, n_chan, store_body, 0, unroll=(n_chan <= 8))


def sab_forward(x, w):
    """SAB forward.  x: (N, C, H, W), w: (1, 2, KS, KS) conv weight (no bias)."""
    N, C, H, W = x.shape
    out_dtype = x.dtype
    HW = H * W
    Lp = _round_up(HW, LANES)            # flattened spatial extent, padded to a lane multiple
    R = Lp // LANES

    # Free, contiguous reshape (no transposes): (N, C, H, W) -> (N, C, R, 128).
    x_flat = x.reshape(N, C, HW)
    if Lp != HW:
        # TODO(synk): for H*W not a multiple of 128 this pad costs one extra HBM
        # pass; avoid it by masking the last lane block in-kernel instead.
        x_flat = jnp.pad(x_flat, ((0, 0), (0, 0), (0, Lp - HW)))
    x_blk = x_flat.reshape(N, C, R, LANES)

    # --- grid-invariant constants: SMEM weights + one folded mask input --------
    w_flat = w.reshape(-1).astype(jnp.float32)                      # (2*KS*KS,)
    flat = jnp.arange(Lp, dtype=jnp.int32)
    in_img = flat < HW
    col = flat % W
    row = flat // W
    masks = []
    for dx in range(KS):                                            # column validity per dx
        sx = dx - PAD
        masks.append(in_img & (col + sx >= 0) & (col + sx < W))
    for dy in range(KS):                                            # row validity per dy
        sy = dy - PAD
        masks.append(in_img & (row + sy >= 0) & (row + sy < H))
    mask = jnp.stack(masks, axis=0).astype(jnp.float32).reshape(2 * KS, R, LANES)

    # --- VMEM budget: in/out double buffers + resident masks + slack -----------
    blk_bytes = C * R * LANES * x.dtype.itemsize
    mask_bytes = 2 * KS * R * LANES * 4
    need = 2 * (blk_bytes + blk_bytes) + 2 * mask_bytes + (4 << 20)
    try:
        cap = int(pltpu.get_tpu_info().vmem_capacity_bytes) - (8 << 20)  # physical - headroom
    except Exception:                                                    # no TPU info available
        cap = 56 << 20                                                   # v7x-safe fallback
    vmem_limit = int(min(max(need, 16 << 20), cap))
    # TODO(synk): if need > cap (very large C*H*W on v7x), add a channel-tile grid
    # axis (pass 1: pooled-conv gate, pass 2: per-channel-tile rescale).

    kernel = functools.partial(_sab_kernel, img_w=W)
    grid_spec = pltpu.PrefetchScalarGridSpec(
        num_scalar_prefetch=1,                                      # w_flat -> SMEM
        grid=(N,),                                                  # one image per step
        in_specs=[
            pl.BlockSpec((2 * KS, R, LANES), lambda i, w_s: (0, 0, 0)),       # masks (resident)
            pl.BlockSpec((None, C, R, LANES), lambda i, w_s: (i, 0, 0, 0)),   # x image (contiguous DMA)
        ],
        out_specs=pl.BlockSpec((None, C, R, LANES), lambda i, w_s: (i, 0, 0, 0)),
    )
    out_blk = pl.pallas_call(
        kernel,
        out_shape=jax.ShapeDtypeStruct((N, C, R, LANES), out_dtype),
        grid_spec=grid_spec,
        compiler_params=pltpu.CompilerParams(
            # Batch axis is independent -> shards across both TensorCores on v7x.
            dimension_semantics=("parallel",),
            vmem_limit_bytes=vmem_limit,
        ),
    )(w_flat, mask, x_blk)

    # Free reshape back to NCHW (slice is a no-op when H*W is already a 128 multiple).
    out = out_blk.reshape(N, C, Lp)[:, :, :HW].reshape(N, C, H, W)
    return out


def sab_reference(x, w):
    """Pure-JAX reference matching the PyTorch forward."""
    ch_max = jnp.max(x, axis=1, keepdims=True)
    ch_mean = jnp.mean(x, axis=1, keepdims=True)
    pooled = jnp.concatenate([ch_max, ch_mean], axis=1)             # (N, 2, H, W)
    conv = jax.lax.conv_general_dilated(
        pooled, w, window_strides=(1, 1),
        padding=[(PAD, PAD), (PAD, PAD)],
        dimension_numbers=("NCHW", "OIHW", "NCHW"),
        precision=jax.lax.Precision.HIGHEST,
    )
    conv = jnp.maximum(conv, 0.0)
    return x * jax.nn.sigmoid(conv)


if __name__ == "__main__":
    key = jax.random.PRNGKey(0)
    kx, kw = jax.random.split(key)

    N, C, H, W = 2, 4, 16, 16
    x = jax.random.normal(kx, (N, C, H, W), dtype=jnp.float32)
    # Deterministic synthetic conv weight (Basic(2, 1, 5) -> shape (1, 2, 5, 5)).
    w = jax.random.normal(kw, (1, 2, KS, KS), dtype=jnp.float32) * 0.1

    out = jax.block_until_ready(sab_forward(x, w))
    ref = sab_reference(x, w)
    err = float(jnp.max(jnp.abs(out - ref)))
    assert err < 1e-4, f"max abs error {err}"

    print("KERNEL_OK")
</pallas_src>

<mosaic_0001>
module attributes {stable_mosaic.version = 11 : i64} {
  func.func @_sab_kernel(%arg0: i32, %arg1: memref<50xf32, #tpu.memory_space<smem>>, %arg2: memref<10x2x128xf32, #tpu.memory_space<vmem>>, %arg3: memref<1x4x2x128xf32, #tpu.memory_space<vmem>>, %arg4: memref<1x4x2x128xf32, #tpu.memory_space<vmem>>) attributes {dimension_semantics = [#tpu.dimension_semantics<parallel>], iteration_bounds = array<i64: 2>, scalar_prefetch = 1 : i64, scratch_operands = 0 : i64, tpu.core_type = #tpu.core_type<tc>, window_params = [{pipeline_mode = #tpu.pipeline_mode<synchronous>, transform_indices = @transform_0, window_bounds = array<i64: 10, 2, 128>}, {transform_indices = @transform_1, window_bounds = array<i64: 1, 4, 2, 128>}, {transform_indices = @transform_2, window_bounds = array<i64: 1, 4, 2, 128>}]} {
    %c0 = arith.constant 0 : index
    %c0_0 = arith.constant 0 : index
    %c0_1 = arith.constant 0 : index
    %c0_2 = arith.constant 0 : index
    %0 = vector.load %arg3[%c0, %c0_0, %c0_1, %c0_2] : memref<1x4x2x128xf32, #tpu.memory_space<vmem>>, vector<1x1x2x128xf32>
    %1 = vector.shape_cast %0 : vector<1x1x2x128xf32> to vector<2x128xf32>
    %c1_i32 = arith.constant 1 : i32
    %c0_3 = arith.constant 0 : index
    %2 = arith.index_cast %c1_i32 : i32 to index
    %c0_4 = arith.constant 0 : index
    %c0_5 = arith.constant 0 : index
    %3 = vector.load %arg3[%c0_3, %2, %c0_4, %c0_5] : memref<1x4x2x128xf32, #tpu.memory_space<vmem>>, vector<1x1x2x128xf32>
    %4 = vector.shape_cast %3 : vector<1x1x2x128xf32> to vector<2x128xf32>
    %5 = arith.maximumf %1, %4 : vector<2x128xf32>
    %6 = arith.addf %1, %4 : vector<2x128xf32>
    %c2_i32 = arith.constant 2 : i32
    %c0_6 = arith.constant 0 : index
    %7 = arith.index_cast %c2_i32 : i32 to index
    %c0_7 = arith.constant 0 : index
    %c0_8 = arith.constant 0 : index
    %8 = vector.load %arg3[%c0_6, %7, %c0_7, %c0_8] : memref<1x4x2x128xf32, #tpu.memory_space<vmem>>, vector<1x1x2x128xf32>
    %9 = vector.shape_cast %8 : vector<1x1x2x128xf32> to vector<2x128xf32>
    %10 = arith.maximumf %5, %9 : vector<2x128xf32>
    %11 = arith.addf %6, %9 : vector<2x128xf32>
    %c3_i32 = arith.constant 3 : i32
    %c0_9 = arith.constant 0 : index
    %12 = arith.index_cast %c3_i32 : i32 to index
    %c0_10 = arith.constant 0 : index
    %c0_11 = arith.constant 0 : index
    %13 = vector.load %arg3[%c0_9, %12, %c0_10, %c0_11] : memref<1x4x2x128xf32, #tpu.memory_space<vmem>>, vector<1x1x2x128xf32>
    %14 = vector.shape_cast %13 : vector<1x1x2x128xf32> to vector<2x128xf32>
    %15 = arith.maximumf %10, %14 : vector<2x128xf32>
    %16 = arith.addf %11, %14 : vector<2x128xf32>
    %c3_i32_12 = arith.constant 3 : i32
    %cst = arith.constant 2.500000e-01 : f32
    %17 = vector.broadcast %cst : f32 to vector<2x128xf32>
    %18 = arith.mulf %16, %17 : vector<2x128xf32>
    %19 = tpu.iota {dimensions = array<i32: 1>} : vector<2x128xi32>
    %c1_i32_13 = arith.constant 1 : i32
    %20 = tpu.dynamic_rotate %15 by %c1_i32_13 dim 0 : vector<2x128xf32>, i32 -> vector<2x128xf32>
    %c2_i32_14 = arith.constant 2 : i32
    %21 = tpu.dynamic_rotate %20 by %c2_i32_14 dim 1 : vector<2x128xf32>, i32 -> vector<2x128xf32>
    %c1_i32_15 = arith.constant 1 : i32
    %22 = tpu.dynamic_rotate %21 by %c1_i32_15 dim 0 : vector<2x128xf32>, i32 -> vector<2x128xf32>
    %c2_i32_16 = arith.constant 2 : i32
    %23 = vector.broadcast %c2_i32_16 : i32 to vector<2x128xi32>
    %24 = arith.cmpi slt, %19, %23 : vector<2x128xi32>
    %25 = arith.select %24, %21, %22 : vector<2x128xi1>, vector<2x128xf32>
    %c0_17 = arith.constant 0 : index
    %c0_18 = arith.constant 0 : index
    %c0_19 = arith.constant 0 : index
    %26 = vector.load %arg2[%c0_17, %c0_18, %c0_19] : memref<10x2x128xf32, #tpu.memory_space<vmem>>, vector<1x2x128xf32>
    %27 = vector.shape_cast %26 : vector<1x2x128xf32> to vector<2x128xf32>
    %28 = arith.mulf %25, %27 : vector<2x128xf32>
    %c1_i32_20 = arith.constant 1 : i32
    %29 = tpu.dynamic_rotate %15 by %c1_i32_20 dim 0 : vector<2x128xf32>, i32 -> vector<2x128xf32>
    %c1_i32_21 = arith.constant 1 : i32
    %30 = tpu.dynamic_rotate %29 by %c1_i32_21 dim 1 : vector<2x128xf32>, i32 -> vector<2x128xf32>
    %c1_i32_22 = arith.constant 1 : i32
    %31 = tpu.dynamic_rotate %30 by %c1_i32_22 dim 0 : vector<2x128xf32>, i32 -> vector<2x128xf32>
    %c1_i32_23 = arith.constant 1 : i32
    %32 = vector.broadcast %c1_i32_23 : i32 to vector<2x128xi32>
    %33 = arith.cmpi slt, %19, %32 : vector<2x128xi32>
    %34 = arith.select %33, %30, %31 : vector<2x128xi1>, vector<2x128xf32>
    %c1 = arith.constant 1 : index
    %c0_24 = arith.constant 0 : index
    %c0_25 = arith.constant 0 : index
    %35 = vector.load %arg2[%c1, %c0_24, %c0_25] : memref<10x2x128xf32, #tpu.memory_space<vmem>>, vector<1x2x128xf32>
    %36 = vector.shape_cast %35 : vector<1x2x128xf32> to vector<2x128xf32>
    %37 = arith.mulf %34, %36 : vector<2x128xf32>
    %c127_i32 = arith.constant 127 : i32
    %38 = tpu.dynamic_rotate %15 by %c127_i32 dim 1 : vector<2x128xf32>, i32 -> vector<2x128xf32>
    %c1_i32_26 = arith.constant 1 : i32
    %39 = tpu.dynamic_rotate %38 by %c1_i32_26 dim 0 : vector<2x128xf32>, i32 -> vector<2x128xf32>
    %c127_i32_27 = arith.constant 127 : i32
    %40 = vector.broadcast %c127_i32_27 : i32 to vector<2x128xi32>
    %41 = arith.cmpi slt, %19, %40 : vector<2x128xi32>
    %42 = arith.select %41, %38, %39 : vector<2x128xi1>, vector<2x128xf32>
    %c3 = arith.constant 3 : index
    %c0_28 = arith.constant 0 : index
    %c0_29 = arith.constant 0 : index
    %43 = vector.load %arg2[%c3, %c0_28, %c0_29] : memref<10x2x128xf32, #tpu.memory_space<vmem>>, vector<1x2x128xf32>
    %44 = vector.shape_cast %43 : vector<1x2x128xf32> to vector<2x128xf32>
    %45 = arith.mulf %42, %44 : vector<2x128xf32>
    %c126_i32 = arith.constant 126 : i32
    %46 = tpu.dynamic_rotate %15 by %c126_i32 dim 1 : vector<2x128xf32>, i32 -> vector<2x128xf32>
    %c1_i32_30 = arith.constant 1 : i32
    %47 = tpu.dynamic_rotate %46 by %c1_i32_30 dim 0 : vector<2x128xf32>, i32 -> vector<2x128xf32>
    %c126_i32_31 = arith.constant 126 : i32
    %48 = vector.broadcast %c126_i32_31 : i32 to vector<2x128xi32>
    %49 = arith.cmpi slt, %19, %48 : vector<2x128xi32>
    %50 = arith.select %49, %46, %47 : vector<2x128xi1>, vector<2x128xf32>
    %c4 = arith.constant 4 : index
    %c0_32 = arith.constant 0 : index
    %c0_33 = arith.constant 0 : index
    %51 = vector.load %arg2[%c4, %c0_32, %c0_33] : memref<10x2x128xf32, #tpu.memory_space<vmem>>, vector<1x2x128xf32>
    %52 = vector.shape_cast %51 : vector<1x2x128xf32> to vector<2x128xf32>
    %53 = arith.mulf %50, %52 : vector<2x128xf32>
    %c1_i32_34 = arith.constant 1 : i32
    %54 = tpu.dynamic_rotate %18 by %c1_i32_34 dim 0 : vector<2x128xf32>, i32 -> vector<2x128xf32>
    %c2_i32_35 = arith.constant 2 : i32
    %55 = tpu.dynamic_rotate %54 by %c2_i32_35 dim 1 : vector<2x128xf32>, i32 -> vector<2x128xf32>
    %c1_i32_36 = arith.constant 1 : i32
    %56 = tpu.dynamic_rotate %55 by %c1_i32_36 dim 0 : vector<2x128xf32>, i32 -> vector<2x128xf32>
    %c2_i32_37 = arith.constant 2 : i32
    %57 = vector.broadcast %c2_i32_37 : i32 to vector<2x128xi32>
    %58 = arith.cmpi slt, %19, %57 : vector<2x128xi32>
    %59 = arith.select %58, %55, %56 : vector<2x128xi1>, vector<2x128xf32>
    %c0_38 = arith.constant 0 : index
    %c0_39 = arith.constant 0 : index
    %c0_40 = arith.constant 0 : index
    %60 = vector.load %arg2[%c0_38, %c0_39, %c0_40] : memref<10x2x128xf32, #tpu.memory_space<vmem>>, vector<1x2x128xf32>
    %61 = vector.shape_cast %60 : vector<1x2x128xf32> to vector<2x128xf32>
    %62 = arith.mulf %59, %61 : vector<2x128xf32>
    %c1_i32_41 = arith.constant 1 : i32
    %63 = tpu.dynamic_rotate %18 by %c1_i32_41 dim 0 : vector<2x128xf32>, i32 -> vector<2x128xf32>
    %c1_i32_42 = arith.constant 1 : i32
    %64 = tpu.dynamic_rotate %63 by %c1_i32_42 dim 1 : vector<2x128xf32>, i32 -> vector<2x128xf32>
    %c1_i32_43 = arith.constant 1 : i32
    %65 = tpu.dynamic_rotate %64 by %c1_i32_43 dim 0 : vector<2x128xf32>, i32 -> vector<2x128xf32>
    %c1_i32_44 = arith.constant 1 : i32
    %66 = vector.broadcast %c1_i32_44 : i32 to vector<2x128xi32>
    %67 = arith.cmpi slt, %19, %66 : vector<2x128xi32>
    %68 = arith.select %67, %64, %65 : vector<2x128xi1>, vector<2x128xf32>
    %c1_45 = arith.constant 1 : index
    %c0_46 = arith.constant 0 : index
    %c0_47 = arith.constant 0 : index
    %69 = vector.load %arg2[%c1_45, %c0_46, %c0_47] : memref<10x2x128xf32, #tpu.memory_space<vmem>>, vector<1x2x128xf32>
    %70 = vector.shape_cast %69 : vector<1x2x128xf32> to vector<2x128xf32>
    %71 = arith.mulf %68, %70 : vector<2x128xf32>
    %c127_i32_48 = arith.constant 127 : i32
    %72 = tpu.dynamic_rotate %18 by %c127_i32_48 dim 1 : vector<2x128xf32>, i32 -> vector<2x128xf32>
    %c1_i32_49 = arith.constant 1 : i32
    %73 = tpu.dynamic_rotate %72 by %c1_i32_49 dim 0 : vector<2x128xf32>, i32 -> vector<2x128xf32>
    %c127_i32_50 = arith.constant 127 : i32
    %74 = vector.broadcast %c127_i32_50 : i32 to vector<2x128xi32>
    %75 = arith.cmpi slt, %19, %74 : vector<2x128xi32>
    %76 = arith.select %75, %72, %73 : vector<2x128xi1>, vector<2x128xf32>
    %c3_51 = arith.constant 3 : index
    %c0_52 = arith.constant 0 : index
    %c0_53 = arith.constant 0 : index
    %77 = vector.load %arg2[%c3_51, %c0_52, %c0_53] : memref<10x2x128xf32, #tpu.memory_space<vmem>>, vector<1x2x128xf32>
    %78 = vector.shape_cast %77 : vector<1x2x128xf32> to vector<2x128xf32>
    %79 = arith.mulf %76, %78 : vector<2x128xf32>
    %c126_i32_54 = arith.constant 126 : i32
    %80 = tpu.dynamic_rotate %18 by %c126_i32_54 dim 1 : vector<2x128xf32>, i32 -> vector<2x128xf32>
    %c1_i32_55 = arith.constant 1 : i32
    %81 = tpu.dynamic_rotate %80 by %c1_i32_55 dim 0 : vector<2x128xf32>, i32 -> vector<2x128xf32>
    %c126_i32_56 = arith.constant 126 : i32
    %82 = vector.broadcast %c126_i32_56 : i32 to vector<2x128xi32>
    %83 = arith.cmpi slt, %19, %82 : vector<2x128xi32>
    %84 = arith.select %83, %80, %81 : vector<2x128xi1>, vector<2x128xf32>
    %c4_57 = arith.constant 4 : index
    %c0_58 = arith.constant 0 : index
    %c0_59 = arith.constant 0 : index
    %85 = vector.load %arg2[%c4_57, %c0_58, %c0_59] : memref<10x2x128xf32, #tpu.memory_space<vmem>>, vector<1x2x128xf32>
    %86 = vector.shape_cast %85 : vector<1x2x128xf32> to vector<2x128xf32>
    %87 = arith.mulf %84, %86 : vector<2x128xf32>
    %cst_60 = arith.constant 0.000000e+00 : f32
    %88 = vector.broadcast %cst_60 : f32 to vector<2x128xf32>
    %cst_61 = arith.constant 0.000000e+00 : f32
    %89 = vector.broadcast %cst_61 : f32 to vector<2x128xf32>
    %c0_62 = arith.constant 0 : index
    %90 = memref.load %arg1[%c0_62] : memref<50xf32, #tpu.memory_space<smem>>
    %c25 = arith.constant 25 : index
    %91 = memref.load %arg1[%c25] : memref<50xf32, #tpu.memory_space<smem>>
    %92 = vector.broadcast %90 : f32 to vector<2x128xf32>
    %93 = arith.mulf %92, %28 : vector<2x128xf32>
    %94 = arith.addf %89, %93 : vector<2x128xf32>
    %95 = vector.broadcast %91 : f32 to vector<2x128xf32>
    %96 = arith.mulf %95, %62 : vector<2x128xf32>
    %97 = arith.addf %94, %96 : vector<2x128xf32>
    %c1_63 = arith.constant 1 : index
    %98 = memref.load %arg1[%c1_63] : memref<50xf32, #tpu.memory_space<smem>>
    %c26 = arith.constant 26 : index
    %99 = memref.load %arg1[%c26] : memref<50xf32, #tpu.memory_space<smem>>
    %100 = vector.broadcast %98 : f32 to vector<2x128xf32>
    %101 = arith.mulf %100, %37 : vector<2x128xf32>
    %102 = arith.addf %97, %101 : vector<2x128xf32>
    %103 = vector.broadcast %99 : f32 to vector<2x128xf32>
    %104 = arith.mulf %103, %71 : vector<2x128xf32>
    %105 = arith.addf %102, %104 : vector<2x128xf32>
    %c2 = arith.constant 2 : index
    %106 = memref.load %arg1[%c2] : memref<50xf32, #tpu.memory_space<smem>>
    %c27 = arith.constant 27 : index
    %107 = memref.load %arg1[%c27] : memref<50xf32, #tpu.memory_space<smem>>
    %108 = vector.broadcast %106 : f32 to vector<2x128xf32>
    %109 = arith.mulf %108, %15 : vector<2x128xf32>
    %110 = arith.addf %105, %109 : vector<2x128xf32>
    %111 = vector.broadcast %107 : f32 to vector<2x128xf32>
    %112 = arith.mulf %111, %18 : vector<2x128xf32>
    %113 = arith.addf %110, %112 : vector<2x128xf32>
    %c3_64 = arith.constant 3 : index
    %114 = memref.load %arg1[%c3_64] : memref<50xf32, #tpu.memory_space<smem>>
    %c28 = arith.constant 28 : index
    %115 = memref.load %arg1[%c28] : memref<50xf32, #tpu.memory_space<smem>>
    %116 = vector.broadcast %114 : f32 to vector<2x128xf32>
    %117 = arith.mulf %116, %45 : vector<2x128xf32>
    %118 = arith.addf %113, %117 : vector<2x128xf32>
    %119 = vector.broadcast %115 : f32 to vector<2x128xf32>
    %120 = arith.mulf %119, %79 : vector<2x128xf32>
    %121 = arith.addf %118, %120 : vector<2x128xf32>
    %c4_65 = arith.constant 4 : index
    %122 = memref.load %arg1[%c4_65] : memref<50xf32, #tpu.memory_space<smem>>
    %c29 = arith.constant 29 : index
    %123 = memref.load %arg1[%c29] : memref<50xf32, #tpu.memory_space<smem>>
    %124 = vector.broadcast %122 : f32 to vector<2x128xf32>
    %125 = arith.mulf %124, %53 : vector<2x128xf32>
    %126 = arith.addf %121, %125 : vector<2x128xf32>
    %127 = vector.broadcast %123 : f32 to vector<2x128xf32>
    %128 = arith.mulf %127, %87 : vector<2x128xf32>
    %129 = arith.addf %126, %128 : vector<2x128xf32>
    %c1_i32_66 = arith.constant 1 : i32
    %130 = tpu.dynamic_rotate %129 by %c1_i32_66 dim 0 : vector<2x128xf32>, i32 -> vector<2x128xf32>
    %c32_i32 = arith.constant 32 : i32
    %131 = tpu.dynamic_rotate %130 by %c32_i32 dim 1 : vector<2x128xf32>, i32 -> vector<2x128xf32>
    %c1_i32_67 = arith.constant 1 : i32
    %132 = tpu.dynamic_rotate %131 by %c1_i32_67 dim 0 : vector<2x128xf32>, i32 -> vector<2x128xf32>
    %c32_i32_68 = arith.constant 32 : i32
    %133 = vector.broadcast %c32_i32_68 : i32 to vector<2x128xi32>
    %134 = arith.cmpi slt, %19, %133 : vector<2x128xi32>
    %135 = arith.select %134, %131, %132 : vector<2x128xi1>, vector<2x128xf32>
    %c5 = arith.constant 5 : index
    %c0_69 = arith.constant 0 : index
    %c0_70 = arith.constant 0 : index
    %136 = vector.load %arg2[%c5, %c0_69, %c0_70] : memref<10x2x128xf32, #tpu.memory_space<vmem>>, vector<1x2x128xf32>
    %137 = vector.shape_cast %136 : vector<1x2x128xf32> to vector<2x128xf32>
    %138 = arith.mulf %135, %137 : vector<2x128xf32>
    %139 = arith.addf %88, %138 : vector<2x128xf32>
    %cst_71 = arith.constant 0.000000e+00 : f32
    %140 = vector.broadcast %cst_71 : f32 to vector<2x128xf32>
    %c5_72 = arith.constant 5 : index
    %141 = memref.load %arg1[%c5_72] : memref<50xf32, #tpu.memory_space<smem>>
    %c30 = arith.constant 30 : index
    %142 = memref.load %arg1[%c30] : memref<50xf32, #tpu.memory_space<smem>>
    %143 = vector.broadcast %141 : f32 to vector<2x128xf32>
    %144 = arith.mulf %143, %28 : vector<2x128xf32>
    %145 = arith.addf %140, %144 : vector<2x128xf32>
    %146 = vector.broadcast %142 : f32 to vector<2x128xf32>
    %147 = arith.mulf %146, %62 : vector<2x128xf32>
    %148 = arith.addf %145, %147 : vector<2x128xf32>
    %c6 = arith.constant 6 : index
    %149 = memref.load %arg1[%c6] : memref<50xf32, #tpu.memory_space<smem>>
    %c31 = arith.constant 31 : index
    %150 = memref.load %arg1[%c31] : memref<50xf32, #tpu.memory_space<smem>>
    %151 = vector.broadcast %149 : f32 to vector<2x128xf32>
    %152 = arith.mulf %151, %37 : vector<2x128xf32>
    %153 = arith.addf %148, %152 : vector<2x128xf32>
    %154 = vector.broadcast %150 : f32 to vector<2x128xf32>
    %155 = arith.mulf %154, %71 : vector<2x128xf32>
    %156 = arith.addf %153, %155 : vector<2x128xf32>
    %c7 = arith.constant 7 : index
    %157 = memref.load %arg1[%c7] : memref<50xf32, #tpu.memory_space<smem>>
    %c32 = arith.constant 32 : index
    %158 = memref.load %arg1[%c32] : memref<50xf32, #tpu.memory_space<smem>>
    %159 = vector.broadcast %157 : f32 to vector<2x128xf32>
    %160 = arith.mulf %159, %15 : vector<2x128xf32>
    %161 = arith.addf %156, %160 : vector<2x128xf32>
    %162 = vector.broadcast %158 : f32 to vector<2x128xf32>
    %163 = arith.mulf %162, %18 : vector<2x128xf32>
    %164 = arith.addf %161, %163 : vector<2x128xf32>
    %c8 = arith.constant 8 : index
    %165 = memref.load %arg1[%c8] : memref<50xf32, #tpu.memory_space<smem>>
    %c33 = arith.constant 33 : index
    %166 = memref.load %arg1[%c33] : memref<50xf32, #tpu.memory_space<smem>>
    %167 = vector.broadcast %165 : f32 to vector<2x128xf32>
    %168 = arith.mulf %167, %45 : vector<2x128xf32>
    %169 = arith.addf %164, %168 : vector<2x128xf32>
    %170 = vector.broadcast %166 : f32 to vector<2x128xf32>
    %171 = arith.mulf %170, %79 : vector<2x128xf32>
    %172 = arith.addf %169, %171 : vector<2x128xf32>
    %c9 = arith.constant 9 : index
    %173 = memref.load %arg1[%c9] : memref<50xf32, #tpu.memory_space<smem>>
    %c34 = arith.constant 34 : index
    %174 = memref.load %arg1[%c34] : memref<50xf32, #tpu.memory_space<smem>>
    %175 = vector.broadcast %173 : f32 to vector<2x128xf32>
    %176 = arith.mulf %175, %53 : vector<2x128xf32>
    %177 = arith.addf %172, %176 : vector<2x128xf32>
    %178 = vector.broadcast %174 : f32 to vector<2x128xf32>
    %179 = arith.mulf %178, %87 : vector<2x128xf32>
    %180 = arith.addf %177, %179 : vector<2x128xf32>
    %c1_i32_73 = arith.constant 1 : i32
    %181 = tpu.dynamic_rotate %180 by %c1_i32_73 dim 0 : vector<2x128xf32>, i32 -> vector<2x128xf32>
    %c16_i32 = arith.constant 16 : i32
    %182 = tpu.dynamic_rotate %181 by %c16_i32 dim 1 : vector<2x128xf32>, i32 -> vector<2x128xf32>
    %c1_i32_74 = arith.constant 1 : i32
    %183 = tpu.dynamic_rotate %182 by %c1_i32_74 dim 0 : vector<2x128xf32>, i32 -> vector<2x128xf32>
    %c16_i32_75 = arith.constant 16 : i32
    %184 = vector.broadcast %c16_i32_75 : i32 to vector<2x128xi32>
    %185 = arith.cmpi slt, %19, %184 : vector<2x128xi32>
    %186 = arith.select %185, %182, %183 : vector<2x128xi1>, vector<2x128xf32>
    %c6_76 = arith.constant 6 : index
    %c0_77 = arith.constant 0 : index
    %c0_78 = arith.constant 0 : index
    %187 = vector.load %arg2[%c6_76, %c0_77, %c0_78] : memref<10x2x128xf32, #tpu.memory_space<vmem>>, vector<1x2x128xf32>
    %188 = vector.shape_cast %187 : vector<1x2x128xf32> to vector<2x128xf32>
    %189 = arith.mulf %186, %188 : vector<2x128xf32>
    %190 = arith.addf %139, %189 : vector<2x128xf32>
    %cst_79 = arith.constant 0.000000e+00 : f32
    %191 = vector.broadcast %cst_79 : f32 to vector<2x128xf32>
    %c10 = arith.constant 10 : index
    %192 = memref.load %arg1[%c10] : memref<50xf32, #tpu.memory_space<smem>>
    %c35 = arith.constant 35 : index
    %193 = memref.load %arg1[%c35] : memref<50xf32, #tpu.memory_space<smem>>
    %194 = vector.broadcast %192 : f32 to vector<2x128xf32>
    %195 = arith.mulf %194, %28 : vector<2x128xf32>
    %196 = arith.addf %191, %195 : vector<2x128xf32>
    %197 = vector.broadcast %193 : f32 to vector<2x128xf32>
    %198 = arith.mulf %197, %62 : vector<2x128xf32>
    %199 = arith.addf %196, %198 : vector<2x128xf32>
    %c11 = arith.constant 11 : index
    %200 = memref.load %arg1[%c11] : memref<50xf32, #tpu.memory_space<smem>>
    %c36 = arith.constant 36 : index
    %201 = memref.load %arg1[%c36] : memref<50xf32, #tpu.memory_space<smem>>
    %202 = vector.broadcast %200 : f32 to vector<2x128xf32>
    %203 = arith.mulf %202, %37 : vector<2x128xf32>
    %204 = arith.addf %199, %203 : vector<2x128xf32>
    %205 = vector.broadcast %201 : f32 to vector<2x128xf32>
    %206 = arith.mulf %205, %71 : vector<2x128xf32>
    %207 = arith.addf %204, %206 : vector<2x128xf32>
    %c12 = arith.constant 12 : index
    %208 = memref.load %arg1[%c12] : memref<50xf32, #tpu.memory_space<smem>>
    %c37 = arith.constant 37 : index
    %209 = memref.load %arg1[%c37] : memref<50xf32, #tpu.memory_space<smem>>
    %210 = vector.broadcast %208 : f32 to vector<2x128xf32>
    %211 = arith.mulf %210, %15 : vector<2x128xf32>
    %212 = arith.addf %207, %211 : vector<2x128xf32>
    %213 = vector.broadcast %209 : f32 to vector<2x128xf32>
    %214 = arith.mulf %213, %18 : vector<2x128xf32>
    %215 = arith.addf %212, %214 : vector<2x128xf32>
    %c13 = arith.constant 13 : index
    %216 = memref.load %arg1[%c13] : memref<50xf32, #tpu.memory_space<smem>>
    %c38 = arith.constant 38 : index
    %217 = memref.load %arg1[%c38] : memref<50xf32, #tpu.memory_space<smem>>
    %218 = vector.broadcast %216 : f32 to vector<2x128xf32>
    %219 = arith.mulf %218, %45 : vector<2x128xf32>
    %220 = arith.addf %215, %219 : vector<2x128xf32>
    %221 = vector.broadcast %217 : f32 to vector<2x128xf32>
    %222 = arith.mulf %221, %79 : vector<2x128xf32>
    %223 = arith.addf %220, %222 : vector<2x128xf32>
    %c14 = arith.constant 14 : index
    %224 = memref.load %arg1[%c14] : memref<50xf32, #tpu.memory_space<smem>>
    %c39 = arith.constant 39 : index
    %225 = memref.load %arg1[%c39] : memref<50xf32, #tpu.memory_space<smem>>
    %226 = vector.broadcast %224 : f32 to vector<2x128xf32>
    %227 = arith.mulf %226, %53 : vector<2x128xf32>
    %228 = arith.addf %223, %227 : vector<2x128xf32>
    %229 = vector.broadcast %225 : f32 to vector<2x128xf32>
    %230 = arith.mulf %229, %87 : vector<2x128xf32>
    %231 = arith.addf %228, %230 : vector<2x128xf32>
    %232 = arith.addf %190, %231 : vector<2x128xf32>
    %cst_80 = arith.constant 0.000000e+00 : f32
    %233 = vector.broadcast %cst_80 : f32 to vector<2x128xf32>
    %c15 = arith.constant 15 : index
    %234 = memref.load %arg1[%c15] : memref<50xf32, #tpu.memory_space<smem>>
    %c40 = arith.constant 40 : index
    %235 = memref.load %arg1[%c40] : memref<50xf32, #tpu.memory_space<smem>>
    %236 = vector.broadcast %234 : f32 to vector<2x128xf32>
    %237 = arith.mulf %236, %28 : vector<2x128xf32>
    %238 = arith.addf %233, %237 : vector<2x128xf32>
    %239 = vector.broadcast %235 : f32 to vector<2x128xf32>
    %240 = arith.mulf %239, %62 : vector<2x128xf32>
    %241 = arith.addf %238, %240 : vector<2x128xf32>
    %c16 = arith.constant 16 : index
    %242 = memref.load %arg1[%c16] : memref<50xf32, #tpu.memory_space<smem>>
    %c41 = arith.constant 41 : index
    %243 = memref.load %arg1[%c41] : memref<50xf32, #tpu.memory_space<smem>>
    %244 = vector.broadcast %242 : f32 to vector<2x128xf32>
    %245 = arith.mulf %244, %37 : vector<2x128xf32>
    %246 = arith.addf %241, %245 : vector<2x128xf32>
    %247 = vector.broadcast %243 : f32 to vector<2x128xf32>
    %248 = arith.mulf %247, %71 : vector<2x128xf32>
    %249 = arith.addf %246, %248 : vector<2x128xf32>
    %c17 = arith.constant 17 : index
    %250 = memref.load %arg1[%c17] : memref<50xf32, #tpu.memory_space<smem>>
    %c42 = arith.constant 42 : index
    %251 = memref.load %arg1[%c42] : memref<50xf32, #tpu.memory_space<smem>>
    %252 = vector.broadcast %250 : f32 to vector<2x128xf32>
    %253 = arith.mulf %252, %15 : vector<2x128xf32>
    %254 = arith.addf %249, %253 : vector<2x128xf32>
    %255 = vector.broadcast %251 : f32 to vector<2x128xf32>
    %256 = arith.mulf %255, %18 : vector<2x128xf32>
    %257 = arith.addf %254, %256 : vector<2x128xf32>
    %c18 = arith.constant 18 : index
    %258 = memref.load %arg1[%c18] : memref<50xf32, #tpu.memory_space<smem>>
    %c43 = arith.constant 43 : index
    %259 = memref.load %arg1[%c43] : memref<50xf32, #tpu.memory_space<smem>>
    %260 = vector.broadcast %258 : f32 to vector<2x128xf32>
    %261 = arith.mulf %260, %45 : vector<2x128xf32>
    %262 = arith.addf %257, %261 : vector<2x128xf32>
    %263 = vector.broadcast %259 : f32 to vector<2x128xf32>
    %264 = arith.mulf %263, %79 : vector<2x128xf32>
    %265 = arith.addf %262, %264 : vector<2x128xf32>
    %c19 = arith.constant 19 : index
    %266 = memref.load %arg1[%c19] : memref<50xf32, #tpu.memory_space<smem>>
    %c44 = arith.constant 44 : index
    %267 = memref.load %arg1[%c44] : memref<50xf32, #tpu.memory_space<smem>>
    %268 = vector.broadcast %266 : f32 to vector<2x128xf32>
    %269 = arith.mulf %268, %53 : vector<2x128xf32>
    %270 = arith.addf %265, %269 : vector<2x128xf32>
    %271 = vector.broadcast %267 : f32 to vector<2x128xf32>
    %272 = arith.mulf %271, %87 : vector<2x128xf32>
    %273 = arith.addf %270, %272 : vector<2x128xf32>
    %c112_i32 = arith.constant 112 : i32
    %274 = tpu.dynamic_rotate %273 by %c112_i32 dim 1 : vector<2x128xf32>, i32 -> vector<2x128xf32>
    %c1_i32_81 = arith.constant 1 : i32
    %275 = tpu.dynamic_rotate %274 by %c1_i32_81 dim 0 : vector<2x128xf32>, i32 -> vector<2x128xf32>
    %c112_i32_82 = arith.constant 112 : i32
    %276 = vector.broadcast %c112_i32_82 : i32 to vector<2x128xi32>
    %277 = arith.cmpi slt, %19, %276 : vector<2x128xi32>
    %278 = arith.select %277, %274, %275 : vector<2x128xi1>, vector<2x128xf32>
    %c8_83 = arith.constant 8 : index
    %c0_84 = arith.constant 0 : index
    %c0_85 = arith.constant 0 : index
    %279 = vector.load %arg2[%c8_83, %c0_84, %c0_85] : memref<10x2x128xf32, #tpu.memory_space<vmem>>, vector<1x2x128xf32>
    %280 = vector.shape_cast %279 : vector<1x2x128xf32> to vector<2x128xf32>
    %281 = arith.mulf %278, %280 : vector<2x128xf32>
    %282 = arith.addf %232, %281 : vector<2x128xf32>
    %cst_86 = arith.constant 0.000000e+00 : f32
    %283 = vector.broadcast %cst_86 : f32 to vector<2x128xf32>
    %c20 = arith.constant 20 : index
    %284 = memref.load %arg1[%c20] : memref<50xf32, #tpu.memory_space<smem>>
    %c45 = arith.constant 45 : index
    %285 = memref.load %arg1[%c45] : memref<50xf32, #tpu.memory_space<smem>>
    %286 = vector.broadcast %284 : f32 to vector<2x128xf32>
    %287 = arith.mulf %286, %28 : vector<2x128xf32>
    %288 = arith.addf %283, %287 : vector<2x128xf32>
    %289 = vector.broadcast %285 : f32 to vector<2x128xf32>
    %290 = arith.mulf %289, %62 : vector<2x128xf32>
    %291 = arith.addf %288, %290 : vector<2x128xf32>
    %c21 = arith.constant 21 : index
    %292 = memref.load %arg1[%c21] : memref<50xf32, #tpu.memory_space<smem>>
    %c46 = arith.constant 46 : index
    %293 = memref.load %arg1[%c46] : memref<50xf32, #tpu.memory_space<smem>>
    %294 = vector.broadcast %292 : f32 to vector<2x128xf32>
    %295 = arith.mulf %294, %37 : vector<2x128xf32>
    %296 = arith.addf %291, %295 : vector<2x128xf32>
    %297 = vector.broadcast %293 : f32 to vector<2x128xf32>
    %298 = arith.mulf %297, %71 : vector<2x128xf32>
    %299 = arith.addf %296, %298 : vector<2x128xf32>
    %c22 = arith.constant 22 : index
    %300 = memref.load %arg1[%c22] : memref<50xf32, #tpu.memory_space<smem>>
    %c47 = arith.constant 47 : index
    %301 = memref.load %arg1[%c47] : memref<50xf32, #tpu.memory_space<smem>>
    %302 = vector.broadcast %300 : f32 to vector<2x128xf32>
    %303 = arith.mulf %302, %15 : vector<2x128xf32>
    %304 = arith.addf %299, %303 : vector<2x128xf32>
    %305 = vector.broadcast %301 : f32 to vector<2x128xf32>
    %306 = arith.mulf %305, %18 : vector<2x128xf32>
    %307 = arith.addf %304, %306 : vector<2x128xf32>
    %c23 = arith.constant 23 : index
    %308 = memref.load %arg1[%c23] : memref<50xf32, #tpu.memory_space<smem>>
    %c48 = arith.constant 48 : index
    %309 = memref.load %arg1[%c48] : memref<50xf32, #tpu.memory_space<smem>>
    %310 = vector.broadcast %308 : f32 to vector<2x128xf32>
    %311 = arith.mulf %310, %45 : vector<2x128xf32>
    %312 = arith.addf %307, %311 : vector<2x128xf32>
    %313 = vector.broadcast %309 : f32 to vector<2x128xf32>
    %314 = arith.mulf %313, %79 : vector<2x128xf32>
    %315 = arith.addf %312, %314 : vector<2x128xf32>
    %c24 = arith.constant 24 : index
    %316 = memref.load %arg1[%c24] : memref<50xf32, #tpu.memory_space<smem>>
    %c49 = arith.constant 49 : index
    %317 = memref.load %arg1[%c49] : memref<50xf32, #tpu.memory_space<smem>>
    %318 = vector.broadcast %316 : f32 to vector<2x128xf32>
    %319 = arith.mulf %318, %53 : vector<2x128xf32>
    %320 = arith.addf %315, %319 : vector<2x128xf32>
    %321 = vector.broadcast %317 : f32 to vector<2x128xf32>
    %322 = arith.mulf %321, %87 : vector<2x128xf32>
    %323 = arith.addf %320, %322 : vector<2x128xf32>
    %c96_i32 = arith.constant 96 : i32
    %324 = tpu.dynamic_rotate %323 by %c96_i32 dim 1 : vector<2x128xf32>, i32 -> vector<2x128xf32>
    %c1_i32_87 = arith.constant 1 : i32
    %325 = tpu.dynamic_rotate %324 by %c1_i32_87 dim 0 : vector<2x128xf32>, i32 -> vector<2x128xf32>
    %c96_i32_88 = arith.constant 96 : i32
    %326 = vector.broadcast %c96_i32_88 : i32 to vector<2x128xi32>
    %327 = arith.cmpi slt, %19, %326 : vector<2x128xi32>
    %328 = arith.select %327, %324, %325 : vector<2x128xi1>, vector<2x128xf32>
    %c9_89 = arith.constant 9 : index
    %c0_90 = arith.constant 0 : index
    %c0_91 = arith.constant 0 : index
    %329 = vector.load %arg2[%c9_89, %c0_90, %c0_91] : memref<10x2x128xf32, #tpu.memory_space<vmem>>, vector<1x2x128xf32>
    %330 = vector.shape_cast %329 : vector<1x2x128xf32> to vector<2x128xf32>
    %331 = arith.mulf %328, %330 : vector<2x128xf32>
    %332 = arith.addf %282, %331 : vector<2x128xf32>
    %cst_92 = arith.constant 0.000000e+00 : f32
    %333 = vector.broadcast %cst_92 : f32 to vector<2x128xf32>
    %334 = arith.maximumf %332, %333 : vector<2x128xf32>
    %cst_93 = arith.constant 0.000000e+00 : f32
    %335 = vector.broadcast %cst_93 : f32 to vector<2x128xf32>
    %336 = arith.subf %335, %334 : vector<2x128xf32>
    %337 = math.exp %336 : vector<2x128xf32>
    %cst_94 = arith.constant 1.000000e+00 : f32
    %338 = vector.broadcast %cst_94 : f32 to vector<2x128xf32>
    %339 = arith.addf %338, %337 : vector<2x128xf32>
    %cst_95 = arith.constant 1.000000e+00 : f32
    %340 = vector.broadcast %cst_95 : f32 to vector<2x128xf32>
    %341 = arith.divf %340, %339 : vector<2x128xf32>
    %c0_i32 = arith.constant 0 : i32
    %c0_96 = arith.constant 0 : index
    %342 = arith.index_cast %c0_i32 : i32 to index
    %c0_97 = arith.constant 0 : index
    %c0_98 = arith.constant 0 : index
    %343 = vector.load %arg3[%c0_96, %342, %c0_97, %c0_98] : memref<1x4x2x128xf32, #tpu.memory_space<vmem>>, vector<1x1x2x128xf32>
    %344 = vector.shape_cast %343 : vector<1x1x2x128xf32> to vector<2x128xf32>
    %345 = arith.mulf %344, %341 : vector<2x128xf32>
    %c0_99 = arith.constant 0 : index
    %346 = arith.index_cast %c0_i32 : i32 to index
    %c0_100 = arith.constant 0 : index
    %c0_101 = arith.constant 0 : index
    %347 = vector.load %arg4[%c0_99, %346, %c0_100, %c0_101] : memref<1x4x2x128xf32, #tpu.memory_space<vmem>>, vector<1x1x2x128xf32>
    %348 = vector.shape_cast %347 : vector<1x1x2x128xf32> to vector<2x128xf32>
    %349 = vector.shape_cast %345 : vector<2x128xf32> to vector<1x1x2x128xf32>
    tpu.vector_store %arg4[%c0_99, %346, %c0_100, %c0_101], %349 {strides = array<i32>} : memref<1x4x2x128xf32, #tpu.memory_space<vmem>>, vector<1x1x2x128xf32>,
    %c1_i32_102 = arith.constant 1 : i32
    %c0_103 = arith.constant 0 : index
    %350 = arith.index_cast %c1_i32_102 : i32 to index
    %c0_104 = arith.constant 0 : index
    %c0_105 = arith.constant 0 : index
    %351 = vector.load %arg3[%c0_103, %350, %c0_104, %c0_105] : memref<1x4x2x128xf32, #tpu.memory_space<vmem>>, vector<1x1x2x128xf32>
    %352 = vector.shape_cast %351 : vector<1x1x2x128xf32> to vector<2x128xf32>
    %353 = arith.mulf %352, %341 : vector<2x128xf32>
    %c0_106 = arith.constant 0 : index
    %354 = arith.index_cast %c1_i32_102 : i32 to index
    %c0_107 = arith.constant 0 : index
    %c0_108 = arith.constant 0 : index
    %355 = vector.load %arg4[%c0_106, %354, %c0_107, %c0_108] : memref<1x4x2x128xf32, #tpu.memory_space<vmem>>, vector<1x1x2x128xf32>
    %356 = vector.shape_cast %355 : vector<1x1x2x128xf32> to vector<2x128xf32>
    %357 = vector.shape_cast %353 : vector<2x128xf32> to vector<1x1x2x128xf32>
    tpu.vector_store %arg4[%c0_106, %354, %c0_107, %c0_108], %357 {strides = array<i32>} : memref<1x4x2x128xf32, #tpu.memory_space<vmem>>, vector<1x1x2x128xf32>,
    %c2_i32_109 = arith.constant 2 : i32
    %c0_110 = arith.constant 0 : index
    %358 = arith.index_cast %c2_i32_109 : i32 to index
    %c0_111 = arith.constant 0 : index
    %c0_112 = arith.constant 0 : index
    %359 = vector.load %arg3[%c0_110, %358, %c0_111, %c0_112] : memref<1x4x2x128xf32, #tpu.memory_space<vmem>>, vector<1x1x2x128xf32>
    %360 = vector.shape_cast %359 : vector<1x1x2x128xf32> to vector<2x128xf32>
    %361 = arith.mulf %360, %341 : vector<2x128xf32>
    %c0_113 = arith.constant 0 : index
    %362 = arith.index_cast %c2_i32_109 : i32 to index
    %c0_114 = arith.constant 0 : index
    %c0_115 = arith.constant 0 : index
    %363 = vector.load %arg4[%c0_113, %362, %c0_114, %c0_115] : memref<1x4x2x128xf32, #tpu.memory_space<vmem>>, vector<1x1x2x128xf32>
    %364 = vector.shape_cast %363 : vector<1x1x2x128xf32> to vector<2x128xf32>
    %365 = vector.shape_cast %361 : vector<2x128xf32> to vector<1x1x2x128xf32>
    tpu.vector_store %arg4[%c0_113, %362, %c0_114, %c0_115], %365 {strides = array<i32>} : memref<1x4x2x128xf32, #tpu.memory_space<vmem>>, vector<1x1x2x128xf32>,
    %c3_i32_116 = arith.constant 3 : i32
    %c0_117 = arith.constant 0 : index
    %366 = arith.index_cast %c3_i32_116 : i32 to index
    %c0_118 = arith.constant 0 : index
    %c0_119 = arith.constant 0 : index
    %367 = vector.load %arg3[%c0_117, %366, %c0_118, %c0_119] : memref<1x4x2x128xf32, #tpu.memory_space<vmem>>, vector<1x1x2x128xf32>
    %368 = vector.shape_cast %367 : vector<1x1x2x128xf32> to vector<2x128xf32>
    %369 = arith.mulf %368, %341 : vector<2x128xf32>
    %c0_120 = arith.constant 0 : index
    %370 = arith.index_cast %c3_i32_116 : i32 to index
    %c0_121 = arith.constant 0 : index
    %c0_122 = arith.constant 0 : index
    %371 = vector.load %arg4[%c0_120, %370, %c0_121, %c0_122] : memref<1x4x2x128xf32, #tpu.memory_space<vmem>>, vector<1x1x2x128xf32>
    %372 = vector.shape_cast %371 : vector<1x1x2x128xf32> to vector<2x128xf32>
    %373 = vector.shape_cast %369 : vector<2x128xf32> to vector<1x1x2x128xf32>
    tpu.vector_store %arg4[%c0_120, %370, %c0_121, %c0_122], %373 {strides = array<i32>} : memref<1x4x2x128xf32, #tpu.memory_space<vmem>>, vector<1x1x2x128xf32>,
    %c4_i32 = arith.constant 4 : i32
    return
  }
  func.func @transform_0(%arg0: i32, %arg1: memref<50xf32, #tpu.memory_space<smem>>) -> (i32, i32, i32) {
    %c0_i32 = arith.constant 0 : i32
    %c0_i32_0 = arith.constant 0 : i32
    %c0_i32_1 = arith.constant 0 : i32
    %c0_i32_2 = arith.constant 0 : i32
    return %c0_i32, %c0_i32_0, %c0_i32_1 : i32, i32, i32
  }
  func.func @transform_1(%arg0: i32, %arg1: memref<50xf32, #tpu.memory_space<smem>>) -> (i32, i32, i32, i32) {
    %c0_i32 = arith.constant 0 : i32
    %c0_i32_0 = arith.constant 0 : i32
    %c0_i32_1 = arith.constant 0 : i32
    %c0_i32_2 = arith.constant 0 : i32
    return %arg0, %c0_i32, %c0_i32_0, %c0_i32_1 : i32, i32, i32, i32
  }
  func.func @transform_2(%arg0: i32, %arg1: memref<50xf32, #tpu.memory_space<smem>>) -> (i32, i32, i32, i32) {
    %c0_i32 = arith.constant 0 : i32
    %c0_i32_0 = arith.constant 0 : i32
    %c0_i32_1 = arith.constant 0 : i32
    %c0_i32_2 = arith.constant 0 : i32
    return %arg0, %c0_i32, %c0_i32_0, %c0_i32_1 : i32, i32, i32, i32
  }
}

</mosaic_0001>

<bundles_post_ra>
// kernel: tpu_custom_call.1
= control target key start
LH: loop header
LB: loop body
LE: loop exit
PB: predicated region body
PF: predicated region fallthrough
CT: control target
= control target key end

     0   :  { %s989_s12 = smov [#allocation3]   ;;  %s1622_s0 = inlined_call_operand.hbm [shape: f32[50], index: 0, kind: input, shape index: {}]   ;;  %s1623_s1 = inlined_call_operand.hbm [shape: f32[10,2,128], index: 1, kind: input, shape index: {}]   ;;  %s1624_s2 = inlined_call_operand.hbm [shape: f32[2,4,2,128], index: 2, kind: input, shape index: {}]   ;;  %s1625_s3 = inlined_call_operand.hbm [shape: f32[2,4,2,128], index: 3, kind: output, shape index: {}]  }
   0x1   :  { %1655 = sst [smem:[#allocation33_spill]] %s1623_s1 }
   0x2   :  { %1656 = sst [smem:[#allocation34_spill]] %s1624_s2 }
   0x3   :  { %1657 = sst [smem:[#allocation35_spill]] %s1625_s3 }
   0x4   :  { %9 = dma.hbm_to_smem %s1622_s0, 16, %s989_s12, [#allocation2] }
   0x5   :  { %959 = dma.done.wait [#allocation2], 16 }
   0x6   :  { %960 = vsyncadd [#allocation2], 4294967280 }
   0x7   :  { %11 = sfence }
   0x8   :  { %12 = vsyncpa [#allocation5], 0 }
   0x9   :  { %13 = vsyncpa [#allocation8], 0 }
   0xa   :  { %15 = vsyncpa [#allocation8 + $0x1], 0 }
   0xb   :  { %16 = vsyncpa [#allocation6], 0 }
   0xc   :  { %18 = vsyncpa [#allocation6 + $0x1], 0  ;;  %s1026_s15 = smov 0   ;;  %s1028_s16 = smov 0  }
   0xd   :  { %s1030_s17 = smov 0   ;;  %s1032_s18 = smov 0  }
   0xe LB: > { %1658 = sst [smem:[#allocation14_spill]] %s975_s15  ;;  %s1047_s0 = sadd.s32 4294967295, %s987_s18   ;;  %s987_s18 = sphi %s1032_s18, %s1719_s18   ;;  %s983_s17 = sphi %s1030_s17, %s1722_s17   ;;  %s979_s16 = sphi %s1028_s16, %s1721_s16   ;;  %s975_s15 = sphi %s1026_s15, %s1720_s15  }
   0xf   : > { %1659 = sst [smem:[#allocation15_spill]] %s979_s16  ;;  %s707_s19 = sadd.s32 4294967294, %s987_s18  }
  0x10   : > { %1660 = sst [smem:[#allocation16_spill]] %s983_s17  ;;  %p65_p0 = scmp.ne.s32.totalorder %s979_s16, %s975_s15 }
  0x11   : > { %1661 = sst [smem:[#allocation17_spill]] %s987_s18  ;;  %p1626_p1 = scmp.eq.s32.totalorder %s1047_s0, 0 }
  0x12   : > { %1662 = sst [smem:[#allocation18_spill]] %s1047_s0  ;;  %p95_p3 = scmp.eq.s32.totalorder %s707_s19, 1 }
  0x13   : > { %p1056_p4 = por %p1626_p1, %p65_p0  ;;  %p708_p5 = scmp.ge.s32.totalorder %s987_s18, 1 }
  0x14   : > { %p1061_p6 = por %p95_p3, %p65_p0  ;;  %p102_p7 = scmp.lt.s32.totalorder %s987_s18, 3 }
  0x15   : > { %s1663_s20 = scalar_select %p1056_p4, 1, 0 }
  0x16   : > { %s1664_s21 = scalar_select %p1061_p6, 1, 0 }
  0x17   : > { %p1066_p8 = pnand %p708_p5, %p102_p7  ;;  %s990_s23 = smov [#allocation4]  }
  0x18   : > { %1665 = sst [smem:[#allocation19_spill]] %s1664_s21  ;;  %s114_s24 = sshll.u32 %s990_s23, 4  ;;  %s115_s24 = int_to_ptr.vmem [resolvable:$true] %s114_s24 }
  0x19   : > { %s1666_s22 = scalar_select %p1066_p8, 1, 0 }
  0x1a   : > { %p791_p9 = pneg %p1066_p8  ;;  %s1080_s26 = sadd.s32 1, %s987_s18  }
  0x1b   : > { %1668 = sst [smem:[#allocation20_spill]] %s1080_s26  ;;  %s52_s27 = sadd.s32 1, %s983_s17 }
  0x1c   : > { %p1075_p11 = pnand %p791_p9, %p1626_p1  ;;  %s49_s28 = ssub.s32 %s987_s18, %s1080_s26 }
  0x1d   : > { %s874_s29 = scalar_lea.vmem %s115_s24, 320  ;;  %p882_p5 = scmp.lt.s32.totalorder %s115_s24, %s115_s24 }
  0x1e   : > { %p865_p12 = pneg %p1075_p11  ;;  %p875_p13 = scmp.ne.s32.totalorder %s115_s24, %s874_s29 }
  0x1f   : > { %p883_p7 = scmp.lt.s32.totalorder %s874_s29, %s874_s29 }
  0x20   : > { %p877_p0 = pnand %p875_p13, %p865_p12 }
  0x21   : > { %p884_p10 = por %p883_p7, %p882_p5 }
  0x22   : > { %p878_p3 = pneg %p877_p0 }
  0x24   : > { %p885_p2 = pnand %p884_p10, %p878_p3 }
  0x26   : > { %888 = shalt.err (!%p885_p2)
}
  0x27   : > { %s991_s30 = smov 32   ;;  %s992_s4 = smov 2  }
  0x28   : > { %s1669_s1 = sld [smem:[#allocation33_spill]]  ;;  %p50_p2 = scmp.eq.s32.totalorder %s49_s28, 0 }
  0x29   : > { %p59_p9 = scmp.ne.s32.totalorder %s983_s17, %s979_s16  ;;  %p60_p10 = scmp.eq.s32.totalorder %s987_s18, 0 }
  0x2a   : > { %p804_p12 = scmp.lt.s32.totalorder %s987_s18, 2  ;;  %p1671_p0 = scmp.eq.s32.totalorder %s1047_s0, 1 }
  0x2b   : > { %s1100_s7 = scalar_select %p50_p2, %s983_s17, %s52_s27  }
  0x2c   : > { %p61_p13 = por %p60_p10, %p59_p9  ;;  %p1104_p3 = por %p1671_p0, %p59_p9 }
  0x2d   : > { %1670 = sst [smem:[#allocation21_spill]] %s1100_s7  ;;  %s128_s9 = sand.u32 1, %s983_s17  }
  0x2e   : > { %794 = dma.hbm_to_vmem [thread:$0]  (!%p1075_p11), %s1669_s1, 320, %s115_s24, [#allocation5], %s991_s30, %s991_s30, %s992_s4  }
  0x2f   : > { %s1672_s8 = scalar_select %p1104_p3, 1, 0 }
  0x30   : > { %s781_s10 = sshll.u32 %s987_s18, 7  ;;  %s711_s11 = sshll.u32 %s128_s9, 3 }
  0x31   : > { %1673 = sst [smem:[#allocation22_spill]] %s1672_s8  ;;  %s132_s19 = scalar_lea.vmem [#allocation7], %s711_s11 }
  0x32   : > { %s1674_s2 = sld [smem:[#allocation34_spill]]  ;;  %s139_s23 = sshll.u32 %s132_s19, 4  ;;  %s1119_s23 = int_to_ptr.vmem [resolvable:$true] %s139_s23 }
  0x33   : > { %p1115_p11 = pnand %p804_p12, %p61_p13  ;;  %s1121_s25 = scalar_lea.sflag [#allocation8], %s128_s9 }
  0x35   : > { %p891_p7 = pneg %p1115_p11 }
  0x38   : > { %s1113_s14 = scalar_lea.hbm %s1674_s2, %s781_s10  ;;  %s894_s5 = scalar_lea.hbm %s1674_s2, 256 }
  0x39   : > { %s889_s27 = scalar_lea.hbm %s1113_s14, 128  ;;  %p895_p10 = scmp.lt.s32.totalorder %s1113_s14, %s1674_s2 }
  0x3a   : > { %p890_p5 = scmp.ne.s32.totalorder %s1113_s14, %s889_s27  ;;  %p896_p12 = scmp.lt.s32.totalorder %s894_s5, %s889_s27 }
  0x3c   : > { %p892_p2 = pnand %p891_p7, %p890_p5  ;;  %p897_p13 = por %p896_p12, %p895_p10 }
  0x3e   : > { %p893_p9 = pneg %p892_p2 }
  0x40   : > { %p898_p0 = pnand %p897_p13, %p893_p9 }
  0x42   : > { %901 = shalt.err (!%p898_p0)
}
  0x43   : > { %s902_s9 = scalar_lea.vmem %s1119_s23, 128  ;;  %s993_s11 = smov [#allocation7]  }
  0x44   : > { %p903_p1 = scmp.ne.s32.totalorder %s1119_s23, %s902_s9  ;;  %s907_s12 = sshll.u32 %s993_s11, 4  ;;  %s908_s12 = int_to_ptr.vmem [resolvable:$false] %s907_s12 }
  0x45   : > { %s909_s13 = scalar_lea.vmem %s908_s12, 256  ;;  %p910_p2 = scmp.lt.s32.totalorder %s1119_s23, %s908_s12 }
  0x46   : > { %p905_p6 = pnand %p903_p1, %p891_p7  ;;  %p911_p3 = scmp.lt.s32.totalorder %s909_s13, %s902_s9 }
  0x48   : > { %p906_p5 = pneg %p905_p6  ;;  %p912_p4 = por %p911_p3, %p910_p2 }
  0x4a   : > { %p913_p8 = pnand %p912_p4, %p906_p5 }
  0x4c   : > { %916 = shalt.err (!%p913_p8)
}
  0x4d   : > { %798 = dma.hbm_to_vmem [thread:$0]  (!%p1115_p11), %s1113_s14, 128, %s1119_s23, %s1121_s25, %s991_s30, %s991_s30, %s992_s4  }
  0x4e   : > { %p1676_p1 = scmp.ne.s32.totalorder %s1666_s22, 0 }
  0x50   : > { %151 = sbr.rel (%p1676_p1) target bundleno = 456 (0x1c8), region = 28 }
  0x55   : > { %p1677_p6 = scmp.eq.s32.totalorder %s1047_s0, 0 }
  0x57   : > { %962 = dma.done.wait (%p1677_p6), [#allocation5], 320   ;;  %p1678_p7 = pmov %p1677_p6 }
  0x58   : > { %s1152_s19 = sand.u32 1, %s979_s16   ;;  %p1681_p4 = scmp.ne.s32.totalorder %s1663_s20, 0 }
  0x59   : > { %964 = vsyncadd (%p1678_p7), [#allocation5], 4294966976  ;;  %1679 = sst [smem:[#allocation23_spill]] %s1152_s19  ;;  %s1631_s24 = sshll.u32 %s1152_s19, 3 }
  0x5a   : > { %s158_s27 = scalar_lea.sflag [#allocation8], %s1152_s19  ;;  %s1158_s30 = scalar_lea.vmem [#allocation7], %s1631_s24 }
  0x5b   : > { %1680 = sst [smem:[#allocation24_spill]] %s1158_s30 }
  0x5c   : > { %966 = dma.done.wait (%p1681_p4), %s158_s27, 128  }
  0x5d   : > { %968 = vsyncadd (%p1681_p4), %s158_s27, 4294967168  ;;  %v1165_v0 = vld [vmem:[%s1158_s30] sm:$0x3]  ;;  %v718_v1 = vld [vmem:[%s1158_s30 + $0x2] sm:$0x3]  ;;  %vm198_vm0 = vcmask 1047554   ;;  %v196_v21 = vlaneseq }
  0x5e   : > { %v719_v2 = vld [vmem:[%s1158_s30 + $0x4] sm:$0x3]  ;;  %v185_v3 = vmax.f32 %v1165_v0, %v718_v1  ;;  %v186_v4 = vadd.f32 %v718_v1, %v1165_v0  ;;  %v720_v5 = vld [vmem:[%s1158_s30 + $0x6] sm:$0x3]  ;;  %s994_s20 = smov 1   ;;  %s1630_s22 = smov 2  }
  0x5f   : > { %s996_s4 = smov 127   ;;  %s997_s14 = smov 126   ;;  %v1254_v22 = vand.u32 127, %v196_v21 }
  0x60   : > { %v189_v6 = vmax.f32 %v185_v3, %v719_v2  ;;  %v190_v7 = vadd.f32 %v719_v2, %v186_v4  ;;  %s1192_s23 = sld [smem:[#allocation3 + $0x1]] }
  0x61   : > { %s1194_s25 = sld [smem:[#allocation3 + $0x6]]  ;;  %vm225_vm1 = vcmp.lt.s32.totalorder %v1254_v22, 1  ;;  %vm212_vm2 = vcmp.lt.s32.totalorder %v1254_v22, 2  ;;  %vm239_vm3 = vcmp.lt.s32.totalorder %v1254_v22, 127  ;;  %vm253_vm4 = vcmp.lt.s32.totalorder %v1254_v22, 126 }
  0x62   : > { %v1172_v8 = vmax.f32 %v189_v6, %v720_v5  ;;  %v194_v9 = vadd.f32 %v720_v5, %v190_v7  ;;  %s1196_s28 = sld [smem:[#allocation3 + $0xb]]  ;;  %vm365_vm5 = vcmp.lt.s32.totalorder %v1254_v22, 32  ;;  %vm427_vm6 = vcmp.lt.s32.totalorder %v1254_v22, 16 }
  0x63   : > { %s1198_s29 = sld [smem:[#allocation3 + $0x10]]  ;;  %vm523_vm7 = vcmp.lt.s32.totalorder %v1254_v22, 112  ;;  %vm578_vm8 = vcmp.lt.s32.totalorder %v1254_v22, 96 }
  0x64   : > { %v199_v10 = vrot.slane %v1172_v8, 6  ;;  %v1175_v11 = vmul.f32 0.25, %v194_v9  ;;  %s1200_s5 = sld [smem:[#allocation3 + $0x15]] }
  0x65   : > { %s1202_s6 = sld [smem:[#allocation3]] }
  0x66   : > { %v200_v12 = vsel %vm198_vm0, %v199_v10, %v1172_v8  ;;  %v261_v13 = vrot.slane %v1175_v11, 6  ;;  %s1204_s10 = sld [smem:[#allocation3 + $0x5]]  ;;  %v322_v23 = vstv %s1192_s23 }
  0x67   : > { %v201_v14 = vrot.slane %v200_v12, 6  ;;  %s1206_s9 = sld [smem:[#allocation3 + $0xa]]  ;;  %v384_v24 = vstv %s1194_s25 }
  0x68   : > { %v262_v15 = vsel %vm198_vm0, %v261_v13, %v1175_v11  ;;  %1682 = sst [smem:[#allocation25_spill]] %s1196_s28  ;;  %v446_v25 = vstv %s1196_s28 }
  0x69   : > { %v202_v16 = vsel %vm198_vm0, %v201_v14, %v1172_v8  ;;  %v263_v17 = vrot.slane %v262_v15, 6  ;;  %1683 = sst [smem:[#allocation26_spill]] %s1198_s29  ;;  %v487_v26 = vstv %s1198_s29  ;;  %v245_v15 = vld [vmem:[#allocation4 + $0x6] sm:$0x3] }
  0x6a   : > { %v204_v18 = vrot.slane %v202_v16, 1  ;;  %s1208_s11 = sld [smem:[#allocation3 + $0xf]]  ;;  %v542_v27 = vstv %s1200_s5 }
  0x6b   : > { %v264_v19 = vsel %vm198_vm0, %v263_v17, %v1175_v11  ;;  %s1210_s12 = sld [smem:[#allocation3 + $0x14]]  ;;  %v314_v28 = vstv %s1202_s6  ;;  %v231_v17 = vld [vmem:[#allocation4 + $0x2] sm:$0x3] }
  0x6c   : > { %219 = vrot.lane.b32.xlu1 %v204_v18, %s994_s20  ;;  %206 = vrot.lane.b32.xlu0 %v204_v18, %s1630_s22  ;;  %v266_v20 = vrot.slane %v264_v19, 1  ;;  %s1212_s13 = sld [smem:[#allocation3 + $0x1a]]  ;;  %v376_v29 = vstv %s1204_s10 }
  0x6d   : > { %s1214_s27 = sld [smem:[#allocation3 + $0x1f]]  ;;  %v438_v30 = vstv %s1206_s9 }
  0x6e   : > { %s1224_s24 = sld [smem:[#allocation3 + $0x28]] }
  0x6f   : > { %s1226_s1 = sld [smem:[#allocation3 + $0x2d]] }
  0x70   : > { %279 = vrot.lane.b32.xlu1 %v266_v20, %s994_s20  ;;  %268 = vrot.lane.b32.xlu0 %v266_v20, %s1630_s22  ;;  %1684 = sst [smem:[#allocation27_spill]] %s1208_s11  ;;  %v479_v31 = vstv %s1208_s11 }
  0x71   : > { %s1216_s20 = sld [smem:[#allocation3 + $0x24]]  ;;  %v534_v32 = vstv %s1210_s12 }
  0x72   : > { %s1222_s22 = sld [smem:[#allocation3 + $0x23]]  ;;  %v325_v33 = vstv %s1212_s13 }
  0x73   : > { %s1228_s2 = sld [smem:[#allocation3 + $0x8]]  ;;  %v387_v34 = vstv %s1214_s27 }
  0x74   : > { %290 = vrot.lane.b32.xlu1 %v1175_v11, %s996_s4  ;;  %233 = vrot.lane.b32.xlu0 %v1172_v8, %s996_s4  ;;  %s1218_s4 = sld [smem:[#allocation3 + $0x19]]  ;;  %v482_v42 = vstv %s1224_s24 }
  0x75   : > { %s1230_s7 = sld [smem:[#allocation3 + $0x21]]  ;;  %v537_v43 = vstv %s1226_s1 }
  0x76   : > { %s1232_s17 = sld [smem:[#allocation3 + $0x7]] }
  0x77   : > { %1685 = sst [smem:[#allocation28_spill]] %s1216_s20  ;;  %v449_v38 = vstv %s1216_s20 }
  0x78   : > { %301 = vrot.lane.b32.xlu1 %v1175_v11, %s997_s14  ;;  %247 = vrot.lane.b32.xlu0 %v1172_v8, %s997_s14  ;;  %s1220_s14 = sld [smem:[#allocation3 + $0x1e]]  ;;  %v441_v41 = vstv %s1222_s22 }
  0x79   : > { %s1234_s16 = sld [smem:[#allocation3 + $0x2]]  ;;  %v400_v44 = vstv %s1228_s2 }
  0x7a   : > { %s1236_s26 = sld [smem:[#allocation3 + $0x20]]  ;;  %v317_v39 = vstv %s1218_s4 }
  0x7b   : > { %1686 = sst [smem:[#allocation29_spill]] %s1230_s7  ;;  %v403_v50 = vstv %s1230_s7 }
  0x7c   : > { %s1238_s18 = sld [smem:[#allocation3 + $0x9]]  ;;  %v392_v35 = vstv %s1232_s17 }
  0x7d   : > { %s1240_s21 = sld [smem:[#allocation3 + $0x22]]  ;;  %v1294_v48 = vmul.f32 %v392_v35, %v1172_v8 }
  0x7e   : > { %s1242_s15 = sld [smem:[#allocation3 + $0x1b]]  ;;  %v379_v40 = vstv %s1220_s14 }
  0x7f   : > { %s1244_s3 = sld [smem:[#allocation3 + $0x3]]  ;;  %v330_v37 = vstv %s1234_s16 }
  0x80   : > { %s1246_s8 = sld [smem:[#allocation3 + $0x1c]]  ;;  %v395_v36 = vstv %s1236_s26  ;;  %v1301_v51 = vmul.f32 %v330_v37, %v1172_v8 }
  0x81   : > { %s1248_s19 = sld [smem:[#allocation3 + $0x4]]  ;;  %v1297_v49 = vmul.f32 %v395_v36, %v1175_v11 }
  0x82   : > { %s1250_s0 = sld [smem:[#allocation3 + $0x1d]]  ;;  %v408_v54 = vstv %s1238_s18 }
  0x83   : > { %1687 = sst [smem:[#allocation30_spill]] %s1240_s21 }
  0x84   : > { %s1252_s30 = sld [smem:[#allocation3 + $0x16]]  ;;  %v333_v45 = vstv %s1242_s15 }
  0x85   : > { %1688 = sst [smem:[#allocation31_spill]] %s1244_s3  ;;  %v1310_v56 = vmul.f32 %v333_v45, %v1175_v11 }
  0x86   : > { %s1259_s3 = sld [smem:[#allocation3 + $0x2f]]  ;;  %v341_v62 = vstv %s1246_s8  ;;  %s999_s8 = smov 16  }
  0x87   : > { %s1271_s28 = sld [smem:[#allocation3 + $0x17]]  ;;  %v346_v63 = vstv %s1248_s19  ;;  %s1000_s19 = smov 112  }
  0x88   : > { %1689 = sst [smem:[#allocation32_spill]] %s1250_s0 }
  0x89   : > { %s1265_s0 = sld [smem:[#allocation3 + $0x2e]] }
  0x8a   : > { %s1277_s29 = sld [smem:[#allocation3 + $0x30]]  ;;  %v550_v58 = vstv %s1252_s30 }
  0x8b   : > { %s1285_s11 = sld [smem:[#allocation3 + $0x18]]  ;;  %v1328_v10 = vmul.f32 %v550_v58, %v1172_v8 }
  0x8c   : > { %s1690_s17 = sld [smem:[#allocation31_spill]]  ;;  %v553_v59 = vstv %s1259_s3 }
  0x8d   : > { %s1291_s16 = sld [smem:[#allocation3 + $0x31]]  ;;  %v1331_v12 = vmul.f32 %v553_v59, %v1175_v11  ;;  %v217_v59 = vld [vmem:[#allocation4] sm:$0x3] }
  0x8e   : > { %s1303_s26 = sld [smem:[#allocation3 + $0x11]] }
  0x8f   : > { %s1691_s15 = sld [smem:[#allocation32_spill]]  ;;  %v545_v6 = vstv %s1265_s0 }
  0x90   : > { %s1307_s20 = sld [smem:[#allocation3 + $0x29]] }
  0x91   : > { %s1315_s7 = sld [smem:[#allocation3 + $0x2a]] }
  0x92   : > { %v338_v57 = vstv %s1690_s17  ;;  %s1321_s21 = sld [smem:[#allocation3 + $0x12]] }
  0x93   : > { %s1325_s30 = sld [smem:[#allocation3 + $0x2b]] }
  0x94   : > { %s1333_s3 = sld [smem:[#allocation3 + $0xc]] }
  0x95   : > { %v349_v5 = vstv %s1691_s15  ;;  %s1451_s22 = sld [smem:[#allocation3 + $0xd]] }
  0x96   : > { %s1462_s24 = sld [smem:[#allocation3 + $0x13]] }
  0x97   : > { %s1471_s6 = sld [smem:[#allocation3 + $0x26]] }
  0x98   : > { %s1480_s0 = sld [smem:[#allocation3 + $0xe]] }
  0x99   : > { %s1490_s10 = sld [smem:[#allocation3 + $0x27]] }
  0x9a   : > { %s1697_s2 = sld [smem:[#allocation30_spill]] }
  0x9b   : > { %s1512_s18 = sld [smem:[#allocation3 + $0x2c]] }
  0x9c   : > { %s1706_s9 = sld [smem:[#allocation18_spill]] }
  0xa2   : > { %s782_s12 = sshll.u32 %s1706_s9, 7 }
  0xde   : > { %v220_v46 = vpop.permute.xlu1 %219  ;;  %v207_v47 = vpop.permute.xlu0 %206 }
  0xdf   : > { %v221_v52 = vrot.slane %v220_v46, 6  ;;  %v208_v53 = vrot.slane %v207_v47, 6 }
  0xe1   : > { %v222_v60 = vsel %vm198_vm0, %v221_v52, %v220_v46  ;;  %v209_v61 = vsel %vm198_vm0, %v208_v53, %v207_v47  ;;  %v495_v53 = vstv %s1303_s26 }
  0xe2   : > { %v223_v1 = vrot.slane %v222_v60, 6  ;;  %v210_v2 = vrot.slane %v209_v61, 6  ;;  %v280_v3 = vpop.permute.xlu1 %279  ;;  %v269_v4 = vpop.permute.xlu0 %268 }
  0xe3   : > { %v281_v7 = vrot.slane %v280_v3, 6  ;;  %v270_v9 = vrot.slane %v269_v4, 6 }
  0xe4   : > { %v224_v13 = vsel %vm198_vm0, %v223_v1, %v220_v46  ;;  %v211_v14 = vsel %vm198_vm0, %v210_v2, %v207_v47 }
  0xe5   : > { %v227_v18 = vrot.slane %v224_v13, 1  ;;  %v214_v19 = vrot.slane %v211_v14, 1  ;;  %v282_v20 = vsel %vm198_vm0, %v281_v7, %v280_v3  ;;  %v271_v21 = vsel %vm198_vm0, %v270_v9, %v269_v4 }
  0xe6   : > { %v283_v35 = vrot.slane %v282_v20, 6  ;;  %v272_v36 = vrot.slane %v271_v21, 6  ;;  %v1341_v37 = vpop.permute.xlu1 %290  ;;  %v1343_v45 = vpop.permute.xlu0 %233  ;;  %v498_v13 = vstv %s1315_s7  ;;  %s1410_s7 = sld [smem:[#allocation3 + $0x25]] }
  0xe7   : > { %v229_v58 = vsel %vm225_vm1, %v220_v46, %v227_v18  ;;  %v216_v60 = vsel %vm212_vm2, %v207_v47, %v214_v19  ;;  %v292_v61 = vrot.slane %v1341_v37, 6  ;;  %v235_v1 = vrot.slane %v1343_v45, 6 }
  0xe8   : > { %v1353_v2 = vmul.f32 %v231_v17, %v229_v58  ;;  %v284_v7 = vsel %vm198_vm0, %v283_v35, %v280_v3  ;;  %v273_v9 = vsel %vm198_vm0, %v272_v36, %v269_v4  ;;  %v490_v18 = vstv %s1307_s20  ;;  %s1709_s20 = sld [smem:[#allocation22_spill]] }
  0xe9   : > { %v286_v46 = vrot.slane %v284_v7, 1  ;;  %v275_v14 = vrot.slane %v273_v9, 1  ;;  %v1361_v19 = vmul.f32 %v217_v59, %v216_v60  ;;  %v293_v20 = vsel %vm198_vm0, %v292_v61, %v1341_v37 }
  0xea   : > { %v236_v21 = vsel %vm198_vm0, %v235_v1, %v1343_v45  ;;  %v1368_v35 = vmul.f32 %v495_v53, %v1172_v8  ;;  %v1370_v36 = vpop.permute.xlu1 %301  ;;  %v1373_v58 = vmul.f32 %v498_v13, %v1175_v11  ;;  %v454_v9 = vstv %s1333_s3  ;;  %v248_v13 = vpop.permute.xlu0 %247 }
  0xeb   : > { %v323_v61 = vmul.f32 %v322_v23, %v1353_v2  ;;  %v385_v53 = vmul.f32 %v384_v24, %v1353_v2  ;;  %v447_v1 = vmul.f32 %v446_v25, %v1353_v2  ;;  %v277_v47 = vsel %vm212_vm2, %v269_v4, %v275_v14 }
  0xec   : > { %v288_v52 = vsel %vm225_vm1, %v280_v3, %v286_v46  ;;  %v278_v60 = vmul.f32 %v277_v47, %v217_v59  ;;  %v294_v7 = vrot.slane %v293_v20, 6  ;;  %v237_v23 = vrot.slane %v236_v21, 6 }
  0xed   : > { %v543_v16 = vmul.f32 %v542_v27, %v1353_v2  ;;  %v315_v24 = vmul.f32 %v314_v28, %v1361_v19  ;;  %v377_v25 = vmul.f32 %v376_v29, %v1361_v19  ;;  %v303_v4 = vrot.slane %v1370_v36, 6 }
  0xee   : > { %v439_v3 = vmul.f32 %v438_v30, %v1361_v19  ;;  %v535_v59 = vmul.f32 %v534_v32, %v1361_v19  ;;  %v318_v46 = vmul.f32 %v317_v39, %v278_v60  ;;  %v249_v14 = vrot.slane %v248_v13, 6  ;;  %p1712_p3 = scmp.ne.s32.totalorder %s1709_s20, 0 }
  0xef   : > { %v1412_v27 = vmul.f32 %v288_v52, %v231_v17  ;;  %v380_v28 = vmul.f32 %v379_v40, %v278_v60  ;;  %v442_v29 = vmul.f32 %v441_v41, %v278_v60  ;;  %v538_v47 = vmul.f32 %v537_v43, %v278_v60 }
  0xf0   : > { %v319_v20 = vadd.f32 %v318_v46, %v315_v24  ;;  %v295_v30 = vsel %vm198_vm0, %v294_v7, %v1341_v37  ;;  %v238_v32 = vsel %vm198_vm0, %v237_v23, %v1343_v45  ;;  %v304_v39 = vsel %vm198_vm0, %v303_v4, %v1370_v36 }
  0xf1   : > { %v381_v17 = vadd.f32 %v380_v28, %v377_v25  ;;  %v443_v52 = vadd.f32 %v442_v29, %v439_v3  ;;  %v297_v21 = vrot.slane %v295_v30, 1  ;;  %v241_v40 = vrot.slane %v238_v32, 1 }
  0xf2   : > { %v305_v55 = vrot.slane %v304_v39, 6  ;;  %v250_v41 = vsel %vm198_vm0, %v249_v14, %v248_v13  ;;  %v324_v43 = vadd.f32 %v323_v61, %v319_v20  ;;  %v539_v24 = vadd.f32 %v538_v47, %v535_v59 }
  0xf3   : > { %v326_v7 = vmul.f32 %v325_v33, %v1412_v27  ;;  %v448_v46 = vadd.f32 %v447_v1, %v443_v52  ;;  %v243_v23 = vsel %vm239_vm3, %v1343_v45, %v241_v40  ;;  %v251_v25 = vrot.slane %v250_v41, 6  ;;  %v259_v45 = vld [vmem:[#allocation4 + $0x8] sm:$0x3] }
  0xf4   : > { %v388_v4 = vmul.f32 %v387_v34, %v1412_v27  ;;  %v299_v3 = vsel %vm239_vm3, %v1341_v37, %v297_v21  ;;  %v306_v61 = vsel %vm198_vm0, %v305_v55, %v1370_v36  ;;  %v386_v59 = vadd.f32 %v385_v53, %v381_v17 }
  0xf5   : > { %v1441_v33 = vmul.f32 %v245_v15, %v243_v23  ;;  %v308_v1 = vrot.slane %v306_v61, 1  ;;  %v252_v14 = vsel %vm198_vm0, %v251_v25, %v248_v13  ;;  %v327_v28 = vadd.f32 %v326_v7, %v324_v43 }
  0xf6   : > { %v255_v29 = vrot.slane %v252_v14, 1  ;;  %v389_v47 = vadd.f32 %v388_v4, %v386_v59  ;;  %v544_v34 = vadd.f32 %v543_v16, %v539_v24  ;;  %v457_v20 = vstv %s1410_s7  ;;  %s1002_s7 = smov [#allocation9]  }
  0xf7   : > { %v483_v37 = vmul.f32 %v482_v42, %v278_v60  ;;  %v1447_v30 = vmul.f32 %v299_v3, %v245_v15  ;;  %v332_v55 = vadd.f32 %v1301_v51, %v327_v28  ;;  %v455_v53 = vmul.f32 %v454_v9, %v1172_v8  ;;  %s921_s1 = sshll.u32 %s1002_s7, 4  ;;  %s922_s1 = int_to_ptr.vmem [resolvable:$false] %s921_s1 }
  0xf8   : > { %v310_v32 = vsel %vm253_vm4, %v1370_v36, %v308_v1  ;;  %v257_v16 = vsel %vm253_vm4, %v248_v13, %v255_v29  ;;  %v394_v39 = vadd.f32 %v1294_v48, %v389_v47  ;;  %v546_v42 = vmul.f32 %v545_v6, %v1412_v27 }
  0xf9   : > { %v1464_v51 = vmul.f32 %v259_v45, %v257_v16  ;;  %v335_v8 = vadd.f32 %v1310_v56, %v332_v55  ;;  %v339_v15 = vmul.f32 %v338_v57, %v1441_v33  ;;  %v458_v36 = vmul.f32 %v457_v20, %v1175_v11 }
  0xfa   : > { %v480_v48 = vmul.f32 %v479_v31, %v1361_v19  ;;  %v397_v6 = vadd.f32 %v1297_v49, %v394_v39  ;;  %v401_v60 = vmul.f32 %v400_v44, %v1441_v33  ;;  %v547_v9 = vadd.f32 %v546_v42, %v544_v34 }
  0xfb   : > { %v488_v56 = vmul.f32 %v487_v26, %v1353_v2  ;;  %v1485_v11 = vmul.f32 %v310_v32, %v259_v45  ;;  %v340_v57 = vadd.f32 %v339_v15, %v335_v8  ;;  %v342_v31 = vmul.f32 %v341_v62, %v1447_v30 }
  0xfc   : > { %v402_v49 = vadd.f32 %v401_v60, %v397_v6  ;;  %v404_v44 = vmul.f32 %v403_v50, %v1447_v30  ;;  %v552_v19 = vadd.f32 %v1328_v10, %v547_v9  ;;  %v484_v13 = vadd.f32 %v483_v37, %v480_v48 }
  0xfd   : > { %v450_v26 = vmul.f32 %v449_v38, %v1412_v27  ;;  %v409_v2 = vmul.f32 %v408_v54, %v1464_v51  ;;  %v343_v17 = vadd.f32 %v342_v31, %v340_v57  ;;  %v347_v62 = vmul.f32 %v346_v63, %v1464_v51 }
  0xfe   : > { %v405_v52 = vadd.f32 %v404_v44, %v402_v49  ;;  %v555_v50 = vadd.f32 %v1331_v12, %v552_v19  ;;  %v489_v21 = vadd.f32 %v488_v56, %v484_v13  ;;  %v491_v10 = vmul.f32 %v490_v18, %v1412_v27 }
  0xff   : > { %v348_v40 = vadd.f32 %v347_v62, %v343_v17  ;;  %v350_v38 = vmul.f32 %v349_v5, %v1485_v11  ;;  %v451_v54 = vadd.f32 %v450_v26, %v448_v46  ;;  %v462_v41 = vstv %s1451_s22  ;;  %s923_s22 = scalar_lea.vmem %s922_s1, 256 }
 0x100   : > { %v410_v43 = vadd.f32 %v409_v2, %v405_v52  ;;  %v1698_v63 = vstv %s1697_s2  ;;  %v1699_v12 = vstv %s1271_s28  ;;  %v492_v23 = vadd.f32 %v491_v10, %v489_v21  ;;  %s1001_s28 = smov 96  }
 0x101   : > { %v412_v24 = vmul.f32 %v1698_v63, %v1485_v11  ;;  %v559_v7 = vmul.f32 %v1699_v12, %v1441_v33  ;;  %v351_v18 = vadd.f32 %v350_v38, %v348_v40  ;;  %v511_v27 = vstv %s1462_s24 }
 0x102   : > { %v456_v25 = vadd.f32 %v455_v53, %v451_v54  ;;  %v465_v5 = vstv %s1471_s6  ;;  %v497_v46 = vadd.f32 %v1368_v35, %v492_v23  ;;  %v470_v61 = vstv %s1480_s0 }
 0x103   : > { %v413_v4 = vadd.f32 %v412_v24, %v410_v43  ;;  %v560_v3 = vadd.f32 %v559_v7, %v555_v50  ;;  %v352_v59 = vrot.slane %v351_v18, 6  ;;  %v463_v14 = vmul.f32 %v462_v41, %v1441_v33 }
 0x104   : > { %v459_v1 = vadd.f32 %v458_v36, %v456_v25  ;;  %v473_v28 = vstv %s1490_s10  ;;  %v1700_v29 = vstv %s1277_s29  ;;  %v500_v34 = vadd.f32 %v1373_v58, %v497_v46  ;;  %s1705_s29 = sld [smem:[#allocation24_spill]] }
 0x105   : > { %v414_v45 = vrot.slane %v413_v4, 6  ;;  %v562_v47 = vmul.f32 %v1700_v29, %v1447_v30  ;;  %v1701_v20 = vstv %s1321_s21  ;;  %v353_v55 = vsel %vm198_vm0, %v352_v59, %v351_v18  ;;  %s998_s21 = smov 32  }
 0x106   : > { %v504_v37 = vmul.f32 %v1701_v20, %v1441_v33  ;;  %v1702_v35 = vstv %s1325_s30  ;;  %v464_v32 = vadd.f32 %v463_v14, %v459_v1  ;;  %v466_v16 = vmul.f32 %v465_v5, %v1447_v30 }
 0x107   : > { %v507_v53 = vmul.f32 %v1702_v35, %v1447_v30  ;;  %v415_v39 = vsel %vm198_vm0, %v414_v45, %v413_v4  ;;  %v354_v42 = vrot.slane %v353_v55, 6  ;;  %v563_v8 = vadd.f32 %v562_v47, %v560_v3 }
 0x108   : > { %v505_v15 = vadd.f32 %v504_v37, %v500_v34  ;;  %v416_v36 = vrot.slane %v415_v39, 6  ;;  %v514_v48 = vstv %s1512_s18  ;;  %v467_v6 = vadd.f32 %v466_v16, %v464_v32  ;;  %v529_v34 = vld [vmem:[#allocation4 + $0x10] sm:$0x3] }
 0x109   : > { %v471_v58 = vmul.f32 %v470_v61, %v1464_v51  ;;  %v355_v33 = vsel %vm198_vm0, %v354_v42, %v351_v18  ;;  %v1703_v60 = vstv %s1285_s11  ;;  %v512_v57 = vmul.f32 %v511_v27, %v1464_v51  ;;  %v371_v27 = vld [vmem:[#allocation4 + $0xa] sm:$0x3]  ;;  %s1707_s11 = sld [smem:[#allocation23_spill]] }
 0x10a   : > { %v567_v9 = vmul.f32 %v1703_v60, %v1464_v51  ;;  %v508_v56 = vadd.f32 %v507_v53, %v505_v15  ;;  %v417_v30 = vsel %vm198_vm0, %v416_v36, %v413_v4  ;;  %v357_v31 = vrot.slane %v355_v33, 1  ;;  %v433_v4 = vld [vmem:[#allocation4 + $0xc] sm:$0x3]  ;;  %v584_v53 = vld [vmem:[#allocation4 + $0x12] sm:$0x3] }
 0x10b   : > { %v472_v49 = vadd.f32 %v471_v58, %v467_v6  ;;  %v474_v44 = vmul.f32 %v473_v28, %v1485_v11  ;;  %v419_v19 = vrot.slane %v417_v30, 1  ;;  %v515_v2 = vmul.f32 %v514_v48, %v1485_v11  ;;  %v770_v33 = vld [vmem:[%s1705_s29 + $0x2] sm:$0x3]  ;;  %v772_v60 = vld [vmem:[%s1705_s29 + $0x4] sm:$0x3] }
 0x10c   : > { %v568_v13 = vadd.f32 %v567_v9, %v563_v8  ;;  %v513_v26 = vadd.f32 %v512_v57, %v508_v56  ;;  %359 = vrot.lane.b32.xlu0 %v357_v31, %s998_s21  ;;  %v1704_v62 = vstv %s1291_s16  ;;  %v774_v9 = vld [vmem:[%s1705_s29 + $0x6] sm:$0x3]  ;;  %s1710_s16 = sld [smem:[#allocation35_spill]] }
 0x10d   : > { %v475_v17 = vadd.f32 %v474_v44, %v472_v49  ;;  %421 = vrot.lane.b32.xlu1 %v419_v19, %s999_s8  ;;  %v570_v51 = vmul.f32 %v1704_v62, %v1485_v11 }
 0x10e   : > { %v516_v52 = vadd.f32 %v515_v2, %v513_v26 }
 0x10f   : > { %v571_v50 = vadd.f32 %v570_v51, %v568_v13  ;;  %s1708_s13 = sshll.u32 %s1707_s11, 3  ;;  %s609_s3 = scalar_lea.sflag [#allocation6], %s1707_s11 }
 0x110   : > { %517 = vrot.lane.b32.xlu0 %v516_v52, %s1000_s19  ;;  %s181_s27 = scalar_lea.vmem [#allocation9], %s1708_s13 }
 0x111   : > { %572 = vrot.lane.b32.xlu1 %v571_v50, %s1001_s28  ;;  %s622_s4 = sshll.u32 %s181_s27, 4  ;;  %s1578_s4 = int_to_ptr.vmem [resolvable:$true] %s622_s4 }
 0x112   : > { %s1711_s30 = smov %s1710_s16  ;;  %s1576_s15 = scalar_lea.hbm %s1710_s16, %s782_s12 }
 0x113   : > { %s917_s26 = scalar_lea.vmem %s1578_s4, 128  ;;  %p924_p10 = scmp.lt.s32.totalorder %s1578_s4, %s922_s1 }
 0x114   : > { %p918_p8 = scmp.ne.s32.totalorder %s1578_s4, %s917_s26  ;;  %p925_p12 = scmp.lt.s32.totalorder %s923_s22, %s917_s26 }
 0x116   : > { %p919_p11 = pnand %p918_p8, %p1712_p3  ;;  %p926_p13 = por %p925_p12, %p924_p10 }
 0x118   : > { %p920_p9 = pneg %p919_p11 }
 0x11a   : > { %p927_p0 = pnand %p926_p13, %p920_p9 }
 0x17e   : > { %v360_v21 = vpop.permute.xlu0 %359 }
 0x17f   : > { %v422_v10 = vpop.permute.xlu1 %421  ;;  %v361_v40 = vrot.slane %v360_v21, 6 }
 0x180   : > { %v423_v38 = vrot.slane %v422_v10, 6 }
 0x181   : > { %v362_v54 = vsel %vm198_vm0, %v361_v40, %v360_v21 }
 0x182   : > { %v424_v41 = vsel %vm198_vm0, %v423_v38, %v422_v10  ;;  %v363_v43 = vrot.slane %v362_v54, 6  ;;  %v518_v63 = vpop.permute.xlu0 %517 }
 0x183   : > { %v425_v24 = vrot.slane %v424_v41, 6  ;;  %v573_v12 = vpop.permute.xlu1 %572  ;;  %v519_v7 = vrot.slane %v518_v63, 6 }
 0x184   : > { %v364_v11 = vsel %vm198_vm0, %v363_v43, %v360_v21  ;;  %v574_v23 = vrot.slane %v573_v12, 6 }
 0x185   : > { %v426_v18 = vsel %vm198_vm0, %v425_v24, %v422_v10  ;;  %v367_v25 = vrot.slane %v364_v11, 1  ;;  %v520_v5 = vsel %vm198_vm0, %v519_v7, %v518_v63 }
 0x186   : > { %v429_v3 = vrot.slane %v426_v18, 1  ;;  %v575_v46 = vsel %vm198_vm0, %v574_v23, %v573_v12  ;;  %v521_v61 = vrot.slane %v520_v5, 6 }
 0x187   : > { %v369_v59 = vsel %vm365_vm5, %v360_v21, %v367_v25  ;;  %v576_v1 = vrot.slane %v575_v46, 6 }
 0x188   : > { %v431_v14 = vsel %vm427_vm6, %v422_v10, %v429_v3  ;;  %v372_v28 = vmul.f32 %v371_v27, %v369_v59  ;;  %v522_v45 = vsel %vm198_vm0, %v521_v61, %v518_v63 }
 0x189   : > { %v434_v29 = vmul.f32 %v433_v4, %v431_v14  ;;  %v577_v47 = vsel %vm198_vm0, %v576_v1, %v573_v12  ;;  %v525_v20 = vrot.slane %v522_v45, 1 }
 0x18a   : > { %v580_v37 = vrot.slane %v577_v47, 1 }
 0x18b   : > { %v435_v55 = vadd.f32 %v434_v29, %v372_v28  ;;  %v527_v35 = vsel %vm523_vm7, %v518_v63, %v525_v20 }
 0x18c   : > { %v582_v32 = vsel %vm578_vm8, %v573_v12, %v580_v37  ;;  %v530_v16 = vmul.f32 %v529_v34, %v527_v35 }
 0x18d   : > { %v476_v39 = vadd.f32 %v475_v17, %v435_v55  ;;  %v585_v42 = vmul.f32 %v584_v53, %v582_v32 }
 0x18f   : > { %v531_v8 = vadd.f32 %v530_v16, %v476_v39 }
 0x191   : > { %v586_v15 = vadd.f32 %v585_v42, %v531_v8 }
 0x193   : > { %v587_v22 = vmax.f32 %v586_v15, 0.0 }
 0x195   : > { %v588_v36 = vsub.f32 0.0, %v587_v22 }
 0x197   : > { %v589_v48 = vmul.f32 1.442695, %v588_v36 }
 0x199   : > { %851 = vpow2.f32 %v589_v48 }
 0x1a6   : > { %v852_v6 = vpop.eup %851 }
 0x1a7   : > { %v591_v58 = vadd.f32 1.0, %v852_v6 }
 0x1a9   : > { %853 = vrcp.f32 %v591_v58 }
 0x1b6   : > { %v854_v56 = vpop.eup %853 }
 0x1b7   : > { %v594_v57 = vmul.f32 %v854_v56, %v1165_v0  ;;  %v597_v30 = vmul.f32 %v854_v56, %v770_v33  ;;  %v601_v31 = vmul.f32 %v854_v56, %v772_v60  ;;  %v605_v49 = vmul.f32 %v854_v56, %v774_v9 }
 0x1b9   : > { %595 = vst [vmem:[%s181_s27] sm:$0x3] %v594_v57  ;;  %771 = vst [vmem:[%s181_s27 + $0x2] sm:$0x3] %v597_v30 }
 0x1ba   : > { %773 = vst [vmem:[%s181_s27 + $0x4] sm:$0x3] %v601_v31  ;;  %775 = vst [vmem:[%s181_s27 + $0x6] sm:$0x3] %v605_v49 }
 0x1bb   : > { %930 = shalt.err (!%p927_p0)
}
 0x1bc   : > { %s931_s23 = scalar_lea.hbm %s1576_s15, 128  ;;  %s935_s5 = scalar_lea.hbm %s1711_s30, 256 }
 0x1bd   : > { %p932_p5 = scmp.ne.s32.totalorder %s1576_s15, %s931_s23  ;;  %p936_p6 = scmp.lt.s32.totalorder %s1576_s15, %s1711_s30 }
 0x1be   : > { %p937_p7 = scmp.lt.s32.totalorder %s935_s5, %s931_s23 }
 0x1bf   : > { %p933_p2 = pnand %p932_p5, %p1712_p3 }
 0x1c0   : > { %p938_p4 = por %p937_p7, %p936_p6 }
 0x1c1   : > { %p934_p1 = pneg %p933_p2 }
 0x1c3   : > { %p939_p8 = pnand %p938_p4, %p934_p1 }
 0x1c5   : > { %942 = shalt.err (!%p939_p8)
}
 0x1c6   : > { %s1713_s10 = smov 2  }
 0x1c7   : > { %789 = dma.vmem_to_hbm [thread:$0]  (%p1712_p3), %s1578_s4, 128, %s1576_s15, %s609_s3, %s998_s21, %s998_s21, %s1713_s10  }
 0x1c8 PF: > { %s1714_s2 = sld [smem:[#allocation14_spill]] }
 0x1c9   : > { %s1715_s18 = sld [smem:[#allocation19_spill]] }
 0x1ca   : > { %s1716_s8 = sld [smem:[#allocation17_spill]] }
 0x1ce   : > { %s637_s19 = sand.u32 1, %s1714_s2  }
 0x1cf   : > { %p1717_p11 = scmp.ne.s32.totalorder %s1715_s18, 0  ;;  %s638_s28 = scalar_lea.sflag [#allocation6], %s637_s19 }
 0x1d0   : > { %p1718_p9 = scmp.ge.s32.totalorder %s1716_s8, 2 }
 0x1d2   : > { %p800_p10 = pnand %p1718_p9, %p1717_p11 }
 0x1d4   : > { %p801_p12 = pneg %p800_p10 }
 0x1d6   : > { %970 = dma.done.wait (%p801_p12), %s638_s28, 128  }
 0x1d7   : > { %972 = vsyncadd (%p801_p12), %s638_s28, 4294967168  ;;  %s1719_s18 = sld [smem:[#allocation20_spill]] }
 0x1d8   : > { %s1720_s15 = sld [smem:[#allocation15_spill]] }
 0x1d9   : > { %s1721_s16 = sld [smem:[#allocation16_spill]] }
 0x1da   : > { %s1722_s17 = sld [smem:[#allocation21_spill]] }
 0x1dd   : > { %p21_p13 = scmp.ge.s32.totalorder %s1719_s18, 4  }
 0x1df   :  { %23 = sbr.rel (!%p21_p13) target bundleno = 14 (0xe), region = 91 }
 0x1e4   :  { %643 = vsyncpa [#allocation5], 1 }
 0x1e5   :  { %645 = vsyncpa [#allocation5 + $0x1], 1 }
 0x1e6   :  { %646 = vsyncpa [#allocation8], 1 }
 0x1e7   :  { %648 = vsyncpa [#allocation8 + $0x1], 1 }
 0x1e8   :  { %649 = vsyncpa [#allocation6], 1 }
 0x1e9   :  { %651 = vsyncpa [#allocation6 + $0x1], 1 }

</bundles_post_ra>
